<compile_context>
chip_gen: v7x
topology: tpu7x:2x2x1
jax: 0.10.0
libtpu: 0.0.40
codegen_flags: <defaults>
</compile_context>

<pallas_src>
import math
import numpy as np
import jax
import jax.numpy as jnp
from jax import lax
from jax.experimental import pallas as pl
from jax.experimental.pallas import tpu as pltpu


def _make_cross_attn_kernel(B, Lq, Lk, D, nhead):
    dh = D // nhead
    eps = 1e-5

    def kernel(tgt_ref, qp_ref, mem_ref, pos_ref,
               wq_ref, bq_ref, wk_ref, bk_ref, wv_ref, bv_ref,
               wo_ref, bo_ref, g_ref, beta_ref,
               o_ref,
               xq_sc, xk_sc, xv_sc, acc_sc):
        h = pl.program_id(0)
        f32 = jnp.float32

        def to_batch_major(x):
            # (L, B, D) value -> (B*L, D) value with batch-major rows, using only
            # aligned sublane slices + a leading-axis concat (cheap VMEM relayout,
            # no HBM round trip).
            return jnp.concatenate([x[:, b, :] for b in range(B)], axis=0)

        # ---- step 0: stage batch-major activations + zero the accumulator ----
        @pl.when(h == 0)
        def _():
            tgt = tgt_ref[...].astype(f32)
            qp = qp_ref[...].astype(f32)
            mem = mem_ref[...].astype(f32)
            pe = pos_ref[...].astype(f32)
            xq_sc[...] = to_batch_major(tgt + qp)     # (B*Lq, D)
            xk_sc[...] = to_batch_major(mem + pe)     # (B*Lk, D)
            xv_sc[...] = to_batch_major(mem)          # (B*Lk, D)
            acc_sc[...] = jnp.zeros_like(acc_sc)

        # ---- per-head projections (scale folded into wq/bq by the wrapper) ----
        q = jnp.dot(xq_sc[...], wq_ref[0], preferred_element_type=f32) + bq_ref[0]
        k = jnp.dot(xk_sc[...], wk_ref[0], preferred_element_type=f32) + bk_ref[0]
        v = jnp.dot(xv_sc[...], wv_ref[0], preferred_element_type=f32) + bv_ref[0]

        qb = q.reshape(B, Lq, dh)                     # leading-dim split only
        kb = k.reshape(B, Lk, dh)
        vb = v.reshape(B, Lk, dh)

        # ---- batched (over B) attention for this head ----
        s = jnp.einsum('bqd,bkd->bqk', qb, kb, preferred_element_type=f32)
        m = jnp.max(s, axis=-1, keepdims=True)
        p = jnp.exp(s - m)
        l = jnp.sum(p, axis=-1, keepdims=True)
        ctx = jnp.einsum('bqk,bkd->bqd', p, vb, preferred_element_type=f32) / l

        # out-projection of this head folded into the accumulation
        acc_sc[...] += jnp.dot(ctx.reshape(B * Lq, dh), wo_ref[0],
                               preferred_element_type=f32)

        # ---- last head: bias + residual (dropout p=0 -> id) + LayerNorm ----
        @pl.when(h == nhead - 1)
        def _():
            tgt_bm = to_batch_major(tgt_ref[...].astype(f32))     # (B*Lq, D)
            res = tgt_bm + acc_sc[...] + bo_ref[...]
            mu = jnp.mean(res, axis=-1, keepdims=True)
            var = jnp.mean((res - mu) ** 2, axis=-1, keepdims=True)
            y = (res - mu) * lax.rsqrt(var + eps) * g_ref[...] + beta_ref[...]
            y = y.astype(o_ref.dtype)
            # write back in the native (Lq, B, D) layout
            for b in range(B):
                o_ref[:, b:b + 1, :] = y[b * Lq:(b + 1) * Lq, :].reshape(Lq, 1, D)

    return kernel


def cross_attention_layer_pallas(tgt, memory, query_pos, pos, params, nhead):
    """tgt: (Lq, B, D), memory: (Lk, B, D) -> (Lq, B, D).

    Matches CrossAttentionLayer.forward_post (normalize_before=False,
    dropout=0.0, no attention / key-padding masks)."""
    Lq, B, D = tgt.shape
    Lk = memory.shape[0]
    dh = D // nhead
    scale = 1.0 / math.sqrt(dh)
    wq, bq, wk, bk, wv, bv, wo, bo, gamma, beta = params

    # Parameter-only prep (tiny (D,D) relayouts; NO activation transposes):
    # fold the softmax scale into Wq/bq and split all projections per head so
    # the kernel never lane-slices activations at dh offsets.
    def split_w(w):   # (D, D) -> (H, D, dh)
        return jnp.transpose(w.reshape(D, nhead, dh), (1, 0, 2))

    def split_b(b):   # (1, D) -> (H, 1, dh)
        return jnp.transpose(b.reshape(1, nhead, dh), (1, 0, 2))

    wq_h = split_w(wq * scale)
    bq_h = split_b(bq * scale)
    wk_h = split_w(wk)
    bk_h = split_b(bk)
    wv_h = split_w(wv)
    bv_h = split_b(bv)
    wo_h = wo.reshape(nhead, dh, D)   # rows h*dh..h*dh+dh-1 of Wo, per head

    kernel = _make_cross_attn_kernel(B, Lq, Lk, D, nhead)

    def resident(shape):
        # same block every step -> DMA'd once, stays in VMEM
        return pl.BlockSpec(shape, lambda h, _n=len(shape): (0,) * _n)

    def per_head(shape):
        # stream one head's slice per grid step (leading-dim block of 1)
        return pl.BlockSpec((1,) + shape[1:],
                            lambda h, _n=len(shape): (h,) + (0,) * (_n - 1))

    out = pl.pallas_call(
        kernel,
        out_shape=jax.ShapeDtypeStruct((Lq, B, D), tgt.dtype),
        grid_spec=pltpu.PrefetchScalarGridSpec(
            num_scalar_prefetch=0,
            grid=(nhead,),
            in_specs=[
                resident((Lq, B, D)),          # tgt
                resident((Lq, B, D)),          # query_pos
                resident((Lk, B, D)),          # memory
                resident((Lk, B, D)),          # pos
                per_head((nhead, D, dh)),      # Wq (per head, scale folded)
                per_head((nhead, 1, dh)),      # bq
                per_head((nhead, D, dh)),      # Wk
                per_head((nhead, 1, dh)),      # bk
                per_head((nhead, D, dh)),      # Wv
                per_head((nhead, 1, dh)),      # bv
                per_head((nhead, dh, D)),      # Wo (per head rows)
                resident((1, D)),              # bo
                resident((1, D)),              # LayerNorm gamma
                resident((1, D)),              # LayerNorm beta
            ],
            out_specs=resident((Lq, B, D)),
            scratch_shapes=[
                pltpu.VMEM((B * Lq, D), jnp.float32),   # staged tgt+query_pos
                pltpu.VMEM((B * Lk, D), jnp.float32),   # staged memory+pos
                pltpu.VMEM((B * Lk, D), jnp.float32),   # staged memory
                pltpu.VMEM((B * Lq, D), jnp.float32),   # f32 output accumulator
            ],
        ),
        compiler_params=pltpu.CompilerParams(
            # accumulation over heads through scratch -> sequential axis
            dimension_semantics=("arbitrary",)),
    )(tgt, query_pos, memory, pos,
      wq_h, bq_h, wk_h, bk_h, wv_h, bv_h, wo_h, bo, gamma, beta)

    return out


# ---------------- pure-JAX reference (for correctness check) ----------------
def ref_cross_attention_layer(tgt, memory, query_pos, pos, params, nhead):
    wq, bq, wk, bk, wv, bv, wo, bo, gamma, beta = params
    Lq, B, D = tgt.shape
    Lk = memory.shape[0]
    dh = D // nhead

    q = (tgt + query_pos) @ wq + bq          # (Lq, B, D)
    k = (memory + pos) @ wk + bk             # (Lk, B, D)
    v = memory @ wv + bv                     # (Lk, B, D)

    def split_heads(x, L):
        return jnp.transpose(x.reshape(L, B, nhead, dh), (1, 2, 0, 3))

    qh = split_heads(q, Lq) / math.sqrt(dh)  # (B, H, Lq, dh)
    kh = split_heads(k, Lk)                  # (B, H, Lk, dh)
    vh = split_heads(v, Lk)                  # (B, H, Lk, dh)

    s = jnp.einsum('bhqd,bhkd->bhqk', qh, kh)
    p = jax.nn.softmax(s, axis=-1)
    ctx = jnp.einsum('bhqk,bhkd->bhqd', p, vh)            # (B, H, Lq, dh)
    ctx = jnp.transpose(ctx, (2, 0, 1, 3)).reshape(Lq, B, D)

    attn_out = ctx @ wo + bo
    res = tgt + attn_out                                  # dropout = identity
    mu = res.mean(axis=-1, keepdims=True)
    var = ((res - mu) ** 2).mean(axis=-1, keepdims=True)
    return (res - mu) / jnp.sqrt(var + 1e-5) * gamma + beta


if __name__ == "__main__":
    d_model = 32
    nhead = 4
    bs = 2
    Lq = 8       # number of queries (tgt length)
    Lk = 64      # memory length (e.g. flattened spatial features)

    key = jax.random.PRNGKey(0)
    ks = jax.random.split(key, 16)

    tgt = jax.random.normal(ks[0], (Lq, bs, d_model), jnp.float32)
    memory = jax.random.normal(ks[1], (Lk, bs, d_model), jnp.float32)
    query_pos = jax.random.normal(ks[2], (Lq, bs, d_model), jnp.float32)
    pos = jax.random.normal(ks[3], (Lk, bs, d_model), jnp.float32)

    std = 1.0 / math.sqrt(d_model)
    wq = jax.random.normal(ks[4], (d_model, d_model), jnp.float32) * std
    wk = jax.random.normal(ks[5], (d_model, d_model), jnp.float32) * std
    wv = jax.random.normal(ks[6], (d_model, d_model), jnp.float32) * std
    wo = jax.random.normal(ks[7], (d_model, d_model), jnp.float32) * std
    bq = jax.random.normal(ks[8], (1, d_model), jnp.float32) * 0.1
    bk = jax.random.normal(ks[9], (1, d_model), jnp.float32) * 0.1
    bv = jax.random.normal(ks[10], (1, d_model), jnp.float32) * 0.1
    bo = jax.random.normal(ks[11], (1, d_model), jnp.float32) * 0.1
    gamma = 1.0 + 0.1 * jax.random.normal(ks[12], (1, d_model), jnp.float32)
    beta = 0.1 * jax.random.normal(ks[13], (1, d_model), jnp.float32)

    params = (wq, bq, wk, bk, wv, bv, wo, bo, gamma, beta)

    out = cross_attention_layer_pallas(tgt, memory, query_pos, pos, params, nhead)
    out = jax.block_until_ready(out)

    ref = ref_cross_attention_layer(tgt, memory, query_pos, pos, params, nhead)
    np.testing.assert_allclose(np.asarray(out), np.asarray(ref),
                               rtol=2e-4, atol=2e-4)
    print("KERNEL_OK")
</pallas_src>

<mosaic_0001>
module attributes {stable_mosaic.version = 11 : i64} {
  func.func @kernel(%arg0: i32, %arg1: memref<8x2x32xf32, #tpu.memory_space<vmem>>, %arg2: memref<8x2x32xf32, #tpu.memory_space<vmem>>, %arg3: memref<64x2x32xf32, #tpu.memory_space<vmem>>, %arg4: memref<64x2x32xf32, #tpu.memory_space<vmem>>, %arg5: memref<1x32x8xf32, #tpu.memory_space<vmem>>, %arg6: memref<1x1x8xf32, #tpu.memory_space<vmem>>, %arg7: memref<1x32x8xf32, #tpu.memory_space<vmem>>, %arg8: memref<1x1x8xf32, #tpu.memory_space<vmem>>, %arg9: memref<1x32x8xf32, #tpu.memory_space<vmem>>, %arg10: memref<1x1x8xf32, #tpu.memory_space<vmem>>, %arg11: memref<1x8x32xf32, #tpu.memory_space<vmem>>, %arg12: memref<1x32xf32, #tpu.memory_space<vmem>>, %arg13: memref<1x32xf32, #tpu.memory_space<vmem>>, %arg14: memref<1x32xf32, #tpu.memory_space<vmem>>, %arg15: memref<8x2x32xf32, #tpu.memory_space<vmem>>, %arg16: memref<16x32xf32, #tpu.memory_space<vmem>>, %arg17: memref<128x32xf32, #tpu.memory_space<vmem>>, %arg18: memref<128x32xf32, #tpu.memory_space<vmem>>, %arg19: memref<16x32xf32, #tpu.memory_space<vmem>>) attributes {dimension_semantics = [#tpu.dimension_semantics<arbitrary>], iteration_bounds = array<i64: 4>, scalar_prefetch = 0 : i64, scratch_operands = 4 : i64, tpu.core_type = #tpu.core_type<tc>, window_params = [{pipeline_mode = #tpu.pipeline_mode<synchronous>, transform_indices = @transform_0, window_bounds = array<i64: 8, 2, 32>}, {pipeline_mode = #tpu.pipeline_mode<synchronous>, transform_indices = @transform_1, window_bounds = array<i64: 8, 2, 32>}, {pipeline_mode = #tpu.pipeline_mode<synchronous>, transform_indices = @transform_2, window_bounds = array<i64: 64, 2, 32>}, {pipeline_mode = #tpu.pipeline_mode<synchronous>, transform_indices = @transform_3, window_bounds = array<i64: 64, 2, 32>}, {transform_indices = @transform_4, window_bounds = array<i64: 1, 32, 8>}, {transform_indices = @transform_5, window_bounds = array<i64: 1, 1, 8>}, {transform_indices = @transform_6, window_bounds = array<i64: 1, 32, 8>}, {transform_indices = @transform_7, window_bounds = array<i64: 1, 1, 8>}, {transform_indices = @transform_8, window_bounds = array<i64: 1, 32, 8>}, {transform_indices = @transform_9, window_bounds = array<i64: 1, 1, 8>}, {transform_indices = @transform_10, window_bounds = array<i64: 1, 8, 32>}, {pipeline_mode = #tpu.pipeline_mode<synchronous>, transform_indices = @transform_11, window_bounds = array<i64: 1, 32>}, {pipeline_mode = #tpu.pipeline_mode<synchronous>, transform_indices = @transform_12, window_bounds = array<i64: 1, 32>}, {pipeline_mode = #tpu.pipeline_mode<synchronous>, transform_indices = @transform_13, window_bounds = array<i64: 1, 32>}, {pipeline_mode = #tpu.pipeline_mode<synchronous>, transform_indices = @transform_14, window_bounds = array<i64: 8, 2, 32>}]} {
    %c0_i32 = arith.constant 0 : i32
    %0 = arith.cmpi eq, %arg0, %c0_i32 : i32
    %1 = arith.extui %0 : i1 to i32
    %c0_i32_0 = arith.constant 0 : i32
    %2 = arith.cmpi ne, %1, %c0_i32_0 : i32
    scf.if %2 {
      %c0_39 = arith.constant 0 : index
      %c0_40 = arith.constant 0 : index
      %c0_41 = arith.constant 0 : index
      %51 = vector.load %arg1[%c0_39, %c0_40, %c0_41] : memref<8x2x32xf32, #tpu.memory_space<vmem>>, vector<8x2x32xf32>
      %c0_42 = arith.constant 0 : index
      %c0_43 = arith.constant 0 : index
      %c0_44 = arith.constant 0 : index
      %52 = vector.load %arg2[%c0_42, %c0_43, %c0_44] : memref<8x2x32xf32, #tpu.memory_space<vmem>>, vector<8x2x32xf32>
      %c0_45 = arith.constant 0 : index
      %c0_46 = arith.constant 0 : index
      %c0_47 = arith.constant 0 : index
      %53 = vector.load %arg3[%c0_45, %c0_46, %c0_47] : memref<64x2x32xf32, #tpu.memory_space<vmem>>, vector<64x2x32xf32>
      %c0_48 = arith.constant 0 : index
      %c0_49 = arith.constant 0 : index
      %c0_50 = arith.constant 0 : index
      %54 = vector.load %arg4[%c0_48, %c0_49, %c0_50] : memref<64x2x32xf32, #tpu.memory_space<vmem>>, vector<64x2x32xf32>
      %55 = arith.addf %51, %52 : vector<8x2x32xf32>
      %56 = vector.extract_strided_slice %55 {offsets = [0, 0, 0], sizes = [8, 1, 32], strides = [1, 1, 1]} : vector<8x2x32xf32> to vector<8x1x32xf32>
      %57 = vector.shape_cast %56 : vector<8x1x32xf32> to vector<8x32xf32>
      %58 = vector.extract_strided_slice %55 {offsets = [0, 1, 0], sizes = [8, 1, 32], strides = [1, 1, 1]} : vector<8x2x32xf32> to vector<8x1x32xf32>
      %59 = vector.shape_cast %58 : vector<8x1x32xf32> to vector<8x32xf32>
      %60 = tpu.concatenate %57, %59 in 0 : vector<8x32xf32>, vector<8x32xf32> -> vector<16x32xf32>
      %c0_51 = arith.constant 0 : index
      %c0_52 = arith.constant 0 : index
      %61 = vector.load %arg16[%c0_51, %c0_52] : memref<16x32xf32, #tpu.memory_space<vmem>>, vector<16x32xf32>
      tpu.vector_store %arg16[%c0_51, %c0_52], %60 {strides = array<i32>} : memref<16x32xf32, #tpu.memory_space<vmem>>, vector<16x32xf32>,
      %62 = arith.addf %53, %54 : vector<64x2x32xf32>
      %63 = vector.extract_strided_slice %62 {offsets = [0, 0, 0], sizes = [64, 1, 32], strides = [1, 1, 1]} : vector<64x2x32xf32> to vector<64x1x32xf32>
      %64 = vector.shape_cast %63 : vector<64x1x32xf32> to vector<64x32xf32>
      %65 = vector.extract_strided_slice %62 {offsets = [0, 1, 0], sizes = [64, 1, 32], strides = [1, 1, 1]} : vector<64x2x32xf32> to vector<64x1x32xf32>
      %66 = vector.shape_cast %65 : vector<64x1x32xf32> to vector<64x32xf32>
      %67 = tpu.concatenate %64, %66 in 0 : vector<64x32xf32>, vector<64x32xf32> -> vector<128x32xf32>
      %c0_53 = arith.constant 0 : index
      %c0_54 = arith.constant 0 : index
      %68 = vector.load %arg17[%c0_53, %c0_54] : memref<128x32xf32, #tpu.memory_space<vmem>>, vector<128x32xf32>
      tpu.vector_store %arg17[%c0_53, %c0_54], %67 {strides = array<i32>} : memref<128x32xf32, #tpu.memory_space<vmem>>, vector<128x32xf32>,
      %69 = vector.extract_strided_slice %53 {offsets = [0, 0, 0], sizes = [64, 1, 32], strides = [1, 1, 1]} : vector<64x2x32xf32> to vector<64x1x32xf32>
      %70 = vector.shape_cast %69 : vector<64x1x32xf32> to vector<64x32xf32>
      %71 = vector.extract_strided_slice %53 {offsets = [0, 1, 0], sizes = [64, 1, 32], strides = [1, 1, 1]} : vector<64x2x32xf32> to vector<64x1x32xf32>
      %72 = vector.shape_cast %71 : vector<64x1x32xf32> to vector<64x32xf32>
      %73 = tpu.concatenate %70, %72 in 0 : vector<64x32xf32>, vector<64x32xf32> -> vector<128x32xf32>
      %c0_55 = arith.constant 0 : index
      %c0_56 = arith.constant 0 : index
      %74 = vector.load %arg18[%c0_55, %c0_56] : memref<128x32xf32, #tpu.memory_space<vmem>>, vector<128x32xf32>
      tpu.vector_store %arg18[%c0_55, %c0_56], %73 {strides = array<i32>} : memref<128x32xf32, #tpu.memory_space<vmem>>, vector<128x32xf32>,
      %cst_57 = arith.constant 0.000000e+00 : f32
      %75 = vector.broadcast %cst_57 : f32 to vector<16x32xf32>
      %c0_58 = arith.constant 0 : index
      %c0_59 = arith.constant 0 : index
      %76 = vector.load %arg19[%c0_58, %c0_59] : memref<16x32xf32, #tpu.memory_space<vmem>>, vector<16x32xf32>
      tpu.vector_store %arg19[%c0_58, %c0_59], %75 {strides = array<i32>} : memref<16x32xf32, #tpu.memory_space<vmem>>, vector<16x32xf32>,
    } else {
    }
    %c0 = arith.constant 0 : index
    %c0_1 = arith.constant 0 : index
    %3 = vector.load %arg16[%c0, %c0_1] : memref<16x32xf32, #tpu.memory_space<vmem>>, vector<16x32xf32>
    %c0_2 = arith.constant 0 : index
    %c0_3 = arith.constant 0 : index
    %c0_4 = arith.constant 0 : index
    %4 = vector.load %arg5[%c0_2, %c0_3, %c0_4] : memref<1x32x8xf32, #tpu.memory_space<vmem>>, vector<1x32x8xf32>
    %5 = vector.shape_cast %4 : vector<1x32x8xf32> to vector<32x8xf32>
    %cst = arith.constant dense<0.000000e+00> : vector<16x8xf32>
    %6 = tpu.matmul %3, %5, %cst {dimension_numbers = #tpu.dot_dimension_numbers<[1], [0], [0], [1], [0, 0, 1, 1], [], []>} : vector<16x32xf32>, vector<32x8xf32>, vector<16x8xf32> -> vector<16x8xf32>
    %c0_5 = arith.constant 0 : index
    %c0_6 = arith.constant 0 : index
    %c0_7 = arith.constant 0 : index
    %7 = vector.load %arg6[%c0_5, %c0_6, %c0_7] : memref<1x1x8xf32, #tpu.memory_space<vmem>>, vector<1x1x8xf32>
    %8 = vector.shape_cast %7 : vector<1x1x8xf32> to vector<1x8xf32>
    %9 = vector.broadcast %8 : vector<1x8xf32> to vector<16x8xf32>
    %10 = arith.addf %6, %9 : vector<16x8xf32>
    %c0_8 = arith.constant 0 : index
    %c0_9 = arith.constant 0 : index
    %11 = vector.load %arg17[%c0_8, %c0_9] : memref<128x32xf32, #tpu.memory_space<vmem>>, vector<128x32xf32>
    %c0_10 = arith.constant 0 : index
    %c0_11 = arith.constant 0 : index
    %c0_12 = arith.constant 0 : index
    %12 = vector.load %arg7[%c0_10, %c0_11, %c0_12] : memref<1x32x8xf32, #tpu.memory_space<vmem>>, vector<1x32x8xf32>
    %13 = vector.shape_cast %12 : vector<1x32x8xf32> to vector<32x8xf32>
    %cst_13 = arith.constant dense<0.000000e+00> : vector<128x8xf32>
    %14 = tpu.matmul %11, %13, %cst_13 {dimension_numbers = #tpu.dot_dimension_numbers<[1], [0], [0], [1], [0, 0, 1, 1], [], []>} : vector<128x32xf32>, vector<32x8xf32>, vector<128x8xf32> -> vector<128x8xf32>
    %c0_14 = arith.constant 0 : index
    %c0_15 = arith.constant 0 : index
    %c0_16 = arith.constant 0 : index
    %15 = vector.load %arg8[%c0_14, %c0_15, %c0_16] : memref<1x1x8xf32, #tpu.memory_space<vmem>>, vector<1x1x8xf32>
    %16 = vector.shape_cast %15 : vector<1x1x8xf32> to vector<1x8xf32>
    %17 = vector.broadcast %16 : vector<1x8xf32> to vector<128x8xf32>
    %18 = arith.addf %14, %17 : vector<128x8xf32>
    %c0_17 = arith.constant 0 : index
    %c0_18 = arith.constant 0 : index
    %19 = vector.load %arg18[%c0_17, %c0_18] : memref<128x32xf32, #tpu.memory_space<vmem>>, vector<128x32xf32>
    %c0_19 = arith.constant 0 : index
    %c0_20 = arith.constant 0 : index
    %c0_21 = arith.constant 0 : index
    %20 = vector.load %arg9[%c0_19, %c0_20, %c0_21] : memref<1x32x8xf32, #tpu.memory_space<vmem>>, vector<1x32x8xf32>
    %21 = vector.shape_cast %20 : vector<1x32x8xf32> to vector<32x8xf32>
    %cst_22 = arith.constant dense<0.000000e+00> : vector<128x8xf32>
    %22 = tpu.matmul %19, %21, %cst_22 {dimension_numbers = #tpu.dot_dimension_numbers<[1], [0], [0], [1], [0, 0, 1, 1], [], []>} : vector<128x32xf32>, vector<32x8xf32>, vector<128x8xf32> -> vector<128x8xf32>
    %c0_23 = arith.constant 0 : index
    %c0_24 = arith.constant 0 : index
    %c0_25 = arith.constant 0 : index
    %23 = vector.load %arg10[%c0_23, %c0_24, %c0_25] : memref<1x1x8xf32, #tpu.memory_space<vmem>>, vector<1x1x8xf32>
    %24 = vector.shape_cast %23 : vector<1x1x8xf32> to vector<1x8xf32>
    %25 = vector.broadcast %24 : vector<1x8xf32> to vector<128x8xf32>
    %26 = arith.addf %22, %25 : vector<128x8xf32>
    %27 = vector.shape_cast %10 : vector<16x8xf32> to vector<2x8x8xf32>
    %28 = vector.shape_cast %18 : vector<128x8xf32> to vector<2x64x8xf32>
    %29 = vector.shape_cast %26 : vector<128x8xf32> to vector<2x64x8xf32>
    "tpu.trace_start"() <{level = 10 : i32, message = "bqd,bkd->bqk"}> : () -> ()
    %cst_26 = arith.constant dense<0.000000e+00> : vector<2x8x64xf32>
    %30 = tpu.matmul %27, %28, %cst_26 {dimension_numbers = #tpu.dot_dimension_numbers<[2], [2], [1], [1], [0, 0, 0, 1, 1, 1], [0], [0]>} : vector<2x8x8xf32>, vector<2x64x8xf32>, vector<2x8x64xf32> -> vector<2x8x64xf32>
    "tpu.trace_stop"() : () -> ()
    %cst_27 = arith.constant dense<0xFF800000> : vector<2x8xf32>
    %31 = vector.multi_reduction <maximumf>, %30, %cst_27 [2] : vector<2x8x64xf32> to vector<2x8xf32>
    %32 = vector.shape_cast %31 : vector<2x8xf32> to vector<2x8x1xf32>
    %33 = vector.broadcast %32 : vector<2x8x1xf32> to vector<2x8x64xf32>
    %34 = arith.subf %30, %33 : vector<2x8x64xf32>
    %35 = math.exp %34 : vector<2x8x64xf32>
    %cst_28 = arith.constant dense<0.000000e+00> : vector<2x8xf32>
    %36 = vector.multi_reduction <add>, %35, %cst_28 [2] : vector<2x8x64xf32> to vector<2x8xf32>
    %37 = vector.shape_cast %36 : vector<2x8xf32> to vector<2x8x1xf32>
    "tpu.trace_start"() <{level = 10 : i32, message = "bqk,bkd->bqd"}> : () -> ()
    %cst_29 = arith.constant dense<0.000000e+00> : vector<2x8x8xf32>
    %38 = tpu.matmul %35, %29, %cst_29 {dimension_numbers = #tpu.dot_dimension_numbers<[2], [1], [1], [2], [0, 0, 0, 1, 1, 2], [0], [0]>} : vector<2x8x64xf32>, vector<2x64x8xf32>, vector<2x8x8xf32> -> vector<2x8x8xf32>
    "tpu.trace_stop"() : () -> ()
    %39 = vector.broadcast %37 : vector<2x8x1xf32> to vector<2x8x8xf32>
    %40 = arith.divf %38, %39 : vector<2x8x8xf32>
    %c0_30 = arith.constant 0 : index
    %c0_31 = arith.constant 0 : index
    %41 = vector.load %arg19[%c0_30, %c0_31] : memref<16x32xf32, #tpu.memory_space<vmem>>, vector<16x32xf32>
    %42 = vector.shape_cast %40 : vector<2x8x8xf32> to vector<16x8xf32>
    %c0_32 = arith.constant 0 : index
    %c0_33 = arith.constant 0 : index
    %c0_34 = arith.constant 0 : index
    %43 = vector.load %arg11[%c0_32, %c0_33, %c0_34] : memref<1x8x32xf32, #tpu.memory_space<vmem>>, vector<1x8x32xf32>
    %44 = vector.shape_cast %43 : vector<1x8x32xf32> to vector<8x32xf32>
    %cst_35 = arith.constant dense<0.000000e+00> : vector<16x32xf32>
    %45 = tpu.matmul %42, %44, %cst_35 {dimension_numbers = #tpu.dot_dimension_numbers<[1], [0], [0], [1], [0, 0, 1, 1], [], []>} : vector<16x8xf32>, vector<8x32xf32>, vector<16x32xf32> -> vector<16x32xf32>
    %46 = arith.addf %41, %45 : vector<16x32xf32>
    %c0_36 = arith.constant 0 : index
    %c0_37 = arith.constant 0 : index
    %47 = vector.load %arg19[%c0_36, %c0_37] : memref<16x32xf32, #tpu.memory_space<vmem>>, vector<16x32xf32>
    tpu.vector_store %arg19[%c0_36, %c0_37], %46 {strides = array<i32>} : memref<16x32xf32, #tpu.memory_space<vmem>>, vector<16x32xf32>,
    %c3_i32 = arith.constant 3 : i32
    %48 = arith.cmpi eq, %arg0, %c3_i32 : i32
    %49 = arith.extui %48 : i1 to i32
    %c0_i32_38 = arith.constant 0 : i32
    %50 = arith.cmpi ne, %49, %c0_i32_38 : i32
    scf.if %50 {
      %c0_39 = arith.constant 0 : index
      %c0_40 = arith.constant 0 : index
      %c0_41 = arith.constant 0 : index
      %51 = vector.load %arg1[%c0_39, %c0_40, %c0_41] : memref<8x2x32xf32, #tpu.memory_space<vmem>>, vector<8x2x32xf32>
      %52 = vector.extract_strided_slice %51 {offsets = [0, 0, 0], sizes = [8, 1, 32], strides = [1, 1, 1]} : vector<8x2x32xf32> to vector<8x1x32xf32>
      %53 = vector.shape_cast %52 : vector<8x1x32xf32> to vector<8x32xf32>
      %54 = vector.extract_strided_slice %51 {offsets = [0, 1, 0], sizes = [8, 1, 32], strides = [1, 1, 1]} : vector<8x2x32xf32> to vector<8x1x32xf32>
      %55 = vector.shape_cast %54 : vector<8x1x32xf32> to vector<8x32xf32>
      %56 = tpu.concatenate %53, %55 in 0 : vector<8x32xf32>, vector<8x32xf32> -> vector<16x32xf32>
      %c0_42 = arith.constant 0 : index
      %c0_43 = arith.constant 0 : index
      %57 = vector.load %arg19[%c0_42, %c0_43] : memref<16x32xf32, #tpu.memory_space<vmem>>, vector<16x32xf32>
      %58 = arith.addf %56, %57 : vector<16x32xf32>
      %c0_44 = arith.constant 0 : index
      %c0_45 = arith.constant 0 : index
      %59 = vector.load %arg12[%c0_44, %c0_45] : memref<1x32xf32, #tpu.memory_space<vmem>>, vector<1x32xf32>
      %60 = vector.broadcast %59 : vector<1x32xf32> to vector<16x32xf32>
      %61 = arith.addf %58, %60 : vector<16x32xf32>
      %cst_46 = arith.constant dense<0.000000e+00> : vector<16xf32>
      %62 = vector.multi_reduction <add>, %61, %cst_46 [1] : vector<16x32xf32> to vector<16xf32>
      %63 = vector.shape_cast %62 : vector<16xf32> to vector<16x1xf32>
      %cst_47 = arith.constant 3.200000e+01 : f32
      %64 = vector.broadcast %cst_47 : f32 to vector<16x1xf32>
      %65 = arith.divf %63, %64 : vector<16x1xf32>
      %66 = vector.broadcast %65 : vector<16x1xf32> to vector<16x32xf32>
      %67 = arith.subf %61, %66 : vector<16x32xf32>
      %68 = arith.mulf %67, %67 : vector<16x32xf32>
      %cst_48 = arith.constant dense<0.000000e+00> : vector<16xf32>
      %69 = vector.multi_reduction <add>, %68, %cst_48 [1] : vector<16x32xf32> to vector<16xf32>
      %70 = vector.shape_cast %69 : vector<16xf32> to vector<16x1xf32>
      %cst_49 = arith.constant 3.200000e+01 : f32
      %71 = vector.broadcast %cst_49 : f32 to vector<16x1xf32>
      %72 = arith.divf %70, %71 : vector<16x1xf32>
      %73 = vector.broadcast %65 : vector<16x1xf32> to vector<16x32xf32>
      %74 = arith.subf %61, %73 : vector<16x32xf32>
      %cst_50 = arith.constant 9.99999974E-6 : f32
      %75 = vector.broadcast %cst_50 : f32 to vector<16x1xf32>
      %76 = arith.addf %72, %75 : vector<16x1xf32>
      %77 = math.rsqrt %76 : vector<16x1xf32>
      %78 = vector.broadcast %77 : vector<16x1xf32> to vector<16x32xf32>
      %79 = arith.mulf %74, %78 : vector<16x32xf32>
      %c0_51 = arith.constant 0 : index
      %c0_52 = arith.constant 0 : index
      %80 = vector.load %arg13[%c0_51, %c0_52] : memref<1x32xf32, #tpu.memory_space<vmem>>, vector<1x32xf32>
      %81 = vector.broadcast %80 : vector<1x32xf32> to vector<16x32xf32>
      %82 = arith.mulf %79, %81 : vector<16x32xf32>
      %c0_53 = arith.constant 0 : index
      %c0_54 = arith.constant 0 : index
      %83 = vector.load %arg14[%c0_53, %c0_54] : memref<1x32xf32, #tpu.memory_space<vmem>>, vector<1x32xf32>
      %84 = vector.broadcast %83 : vector<1x32xf32> to vector<16x32xf32>
      %85 = arith.addf %82, %84 : vector<16x32xf32>
      %86 = vector.extract_strided_slice %85 {offsets = [0, 0], sizes = [8, 32], strides = [1, 1]} : vector<16x32xf32> to vector<8x32xf32>
      %87 = vector.shape_cast %86 : vector<8x32xf32> to vector<8x1x32xf32>
      %c0_55 = arith.constant 0 : index
      %c0_56 = arith.constant 0 : index
      %c0_57 = arith.constant 0 : index
      %88 = vector.load %arg15[%c0_55, %c0_56, %c0_57] : memref<8x2x32xf32, #tpu.memory_space<vmem>>, vector<8x1x32xf32>
      tpu.vector_store %arg15[%c0_55, %c0_56, %c0_57], %87 {strides = array<i32>} : memref<8x2x32xf32, #tpu.memory_space<vmem>>, vector<8x1x32xf32>,
      %89 = vector.extract_strided_slice %85 {offsets = [8, 0], sizes = [8, 32], strides = [1, 1]} : vector<16x32xf32> to vector<8x32xf32>
      %90 = vector.shape_cast %89 : vector<8x32xf32> to vector<8x1x32xf32>
      %c0_58 = arith.constant 0 : index
      %c1 = arith.constant 1 : index
      %c0_59 = arith.constant 0 : index
      %91 = vector.load %arg15[%c0_58, %c1, %c0_59] : memref<8x2x32xf32, #tpu.memory_space<vmem>>, vector<8x1x32xf32>
      tpu.vector_store %arg15[%c0_58, %c1, %c0_59], %90 {strides = array<i32>} : memref<8x2x32xf32, #tpu.memory_space<vmem>>, vector<8x1x32xf32>,
    } else {
    }
    return
  }
  func.func @transform_0(%arg0: i32) -> (i32, i32, i32) {
    %c0_i32 = arith.constant 0 : i32
    %c0_i32_0 = arith.constant 0 : i32
    %c0_i32_1 = arith.constant 0 : i32
    %c0_i32_2 = arith.constant 0 : i32
    return %c0_i32, %c0_i32_0, %c0_i32_1 : i32, i32, i32
  }
  func.func @transform_1(%arg0: i32) -> (i32, i32, i32) {
    %c0_i32 = arith.constant 0 : i32
    %c0_i32_0 = arith.constant 0 : i32
    %c0_i32_1 = arith.constant 0 : i32
    %c0_i32_2 = arith.constant 0 : i32
    return %c0_i32, %c0_i32_0, %c0_i32_1 : i32, i32, i32
  }
  func.func @transform_2(%arg0: i32) -> (i32, i32, i32) {
    %c0_i32 = arith.constant 0 : i32
    %c0_i32_0 = arith.constant 0 : i32
    %c0_i32_1 = arith.constant 0 : i32
    %c0_i32_2 = arith.constant 0 : i32
    return %c0_i32, %c0_i32_0, %c0_i32_1 : i32, i32, i32
  }
  func.func @transform_3(%arg0: i32) -> (i32, i32, i32) {
    %c0_i32 = arith.constant 0 : i32
    %c0_i32_0 = arith.constant 0 : i32
    %c0_i32_1 = arith.constant 0 : i32
    %c0_i32_2 = arith.constant 0 : i32
    return %c0_i32, %c0_i32_0, %c0_i32_1 : i32, i32, i32
  }
  func.func @transform_4(%arg0: i32) -> (i32, i32, i32) {
    %c0_i32 = arith.constant 0 : i32
    %c0_i32_0 = arith.constant 0 : i32
    %c0_i32_1 = arith.constant 0 : i32
    return %arg0, %c0_i32, %c0_i32_0 : i32, i32, i32
  }
  func.func @transform_5(%arg0: i32) -> (i32, i32, i32) {
    %c0_i32 = arith.constant 0 : i32
    %c0_i32_0 = arith.constant 0 : i32
    %c0_i32_1 = arith.constant 0 : i32
    return %arg0, %c0_i32, %c0_i32_0 : i32, i32, i32
  }
  func.func @transform_6(%arg0: i32) -> (i32, i32, i32) {
    %c0_i32 = arith.constant 0 : i32
    %c0_i32_0 = arith.constant 0 : i32
    %c0_i32_1 = arith.constant 0 : i32
    return %arg0, %c0_i32, %c0_i32_0 : i32, i32, i32
  }
  func.func @transform_7(%arg0: i32) -> (i32, i32, i32) {
    %c0_i32 = arith.constant 0 : i32
    %c0_i32_0 = arith.constant 0 : i32
    %c0_i32_1 = arith.constant 0 : i32
    return %arg0, %c0_i32, %c0_i32_0 : i32, i32, i32
  }
  func.func @transform_8(%arg0: i32) -> (i32, i32, i32) {
    %c0_i32 = arith.constant 0 : i32
    %c0_i32_0 = arith.constant 0 : i32
    %c0_i32_1 = arith.constant 0 : i32
    return %arg0, %c0_i32, %c0_i32_0 : i32, i32, i32
  }
  func.func @transform_9(%arg0: i32) -> (i32, i32, i32) {
    %c0_i32 = arith.constant 0 : i32
    %c0_i32_0 = arith.constant 0 : i32
    %c0_i32_1 = arith.constant 0 : i32
    return %arg0, %c0_i32, %c0_i32_0 : i32, i32, i32
  }
  func.func @transform_10(%arg0: i32) -> (i32, i32, i32) {
    %c0_i32 = arith.constant 0 : i32
    %c0_i32_0 = arith.constant 0 : i32
    %c0_i32_1 = arith.constant 0 : i32
    return %arg0, %c0_i32, %c0_i32_0 : i32, i32, i32
  }
  func.func @transform_11(%arg0: i32) -> (i32, i32) {
    %c0_i32 = arith.constant 0 : i32
    %c0_i32_0 = arith.constant 0 : i32
    %c0_i32_1 = arith.constant 0 : i32
    return %c0_i32, %c0_i32_0 : i32, i32
  }
  func.func @transform_12(%arg0: i32) -> (i32, i32) {
    %c0_i32 = arith.constant 0 : i32
    %c0_i32_0 = arith.constant 0 : i32
    %c0_i32_1 = arith.constant 0 : i32
    return %c0_i32, %c0_i32_0 : i32, i32
  }
  func.func @transform_13(%arg0: i32) -> (i32, i32) {
    %c0_i32 = arith.constant 0 : i32
    %c0_i32_0 = arith.constant 0 : i32
    %c0_i32_1 = arith.constant 0 : i32
    return %c0_i32, %c0_i32_0 : i32, i32
  }
  func.func @transform_14(%arg0: i32) -> (i32, i32, i32) {
    %c0_i32 = arith.constant 0 : i32
    %c0_i32_0 = arith.constant 0 : i32
    %c0_i32_1 = arith.constant 0 : i32
    %c0_i32_2 = arith.constant 0 : i32
    return %c0_i32, %c0_i32_0, %c0_i32_1 : i32, i32, i32
  }
}

</mosaic_0001>

<bundles_post_ra>
// kernel: tpu_custom_call.1
= control target key start
LH: loop header
LB: loop body
LE: loop exit
PB: predicated region body
PF: predicated region fallthrough
CT: control target
= control target key end

     0   :  { %s4980_s0 = inlined_call_operand.vmem [shape: f32[8,2,32], index: 0, kind: input, shape index: {}]   ;;  %s4981_s1 = inlined_call_operand.vmem [shape: f32[8,2,32], index: 1, kind: input, shape index: {}]   ;;  %s4982_s2 = inlined_call_operand.vmem [shape: f32[64,2,32], index: 2, kind: input, shape index: {}]   ;;  %s4983_s3 = inlined_call_operand.vmem [shape: f32[64,2,32], index: 3, kind: input, shape index: {}]   ;;  %s4984_s4 = inlined_call_operand.vmem [shape: f32[4,32,8], index: 4, kind: input, shape index: {}]   ;;  %s4985_s5 = inlined_call_operand.vmem [shape: f32[4,1,8], index: 5, kind: input, shape index: {}]   ;;  %s4986_s6 = inlined_call_operand.vmem [shape: f32[4,32,8], index: 6, kind: input, shape index: {}]   ;;  %s4987_s7 = inlined_call_operand.vmem [shape: f32[4,1,8], index: 7, kind: input, shape index: {}]   ;;  %s4988_s8 = inlined_call_operand.vmem [shape: f32[4,32,8], index: 8, kind: input, shape index: {}]   ;;  %s4989_s9 = inlined_call_operand.vmem [shape: f32[4,1,8], index: 9, kind: input, shape index: {}]   ;;  %s4990_s10 = inlined_call_operand.vmem [shape: f32[4,8,32], index: 10, kind: input, shape index: {}]   ;;  %s4991_s11 = inlined_call_operand.vmem [shape: f32[1,32], index: 11, kind: input, shape index: {}]   ;;  %s4992_s12 = inlined_call_operand.vmem [shape: f32[1,32], index: 12, kind: input, shape index: {}]   ;;  %s4993_s13 = inlined_call_operand.vmem [shape: f32[1,32], index: 13, kind: input, shape index: {}]   ;;  %s4994_s14 = inlined_call_operand.hbm [shape: f32[8,2,32], index: 14, kind: output, shape index: {}]  }
   0x1   :  { %5116 = sst [smem:[#allocation85_spill]] %s4984_s4 }
   0x2   :  { %5117 = sst [smem:[#allocation86_spill]] %s4993_s13 }
   0x3   :  { %5118 = sst [smem:[#allocation87_spill]] %s4994_s14 }
   0x4   :  { %19 = vsyncpa [#allocation7], 0  ;;  %s3387_s29 = smov 0  }
   0x5 LB: > { %5119 = sst [smem:[#allocation9_spill]] %s3302_s29  ;;  %s3393_s30 = sadd.s32 4294967295, %s3302_s29   ;;  %s3302_s29 = sphi %s3387_s29, %s25_s29  }
   0x6   : > { %p2812_p0 = scmp.ge.s32.totalorder %s3302_s29, 1  ;;  %p461_p1 = scmp.lt.s32.totalorder %s3302_s29, 5 }
   0x8   : > { %p462_p2 = pnand %p2812_p0, %p461_p1 }
   0x9   : > { %p525_p3 = scmp.lt.s32.totalorder (!%p462_p2), %s3393_s30, 3  ;;  %s5120_s4 = sld [smem:[#allocation85_spill]] (!%p462_p2) }
   0xa   : > { %465 = sbr.rel (%p462_p2) target bundleno = 1641 (0x669), region = 76  ;;  %p2820_p4 = scmp.ne.s32.totalorder (!%p462_p2), %s3393_s30, 0 }
  0x11   : > { %s3399_s15 = scalar_select %p525_p3, %s3393_s30, 3 }
  0x12   : > { %556 = sbr.rel (%p2820_p4) target bundleno = 194 (0xc2), region = 80 }
  0x13   : > { %s2888_s16 = sshll.u32 %s3399_s15, 5  ;;  %s540_s28 = scalar_lea.vmem %s4987_s7, %s3399_s15 }
  0x14   : > { %s3409_s22 = scalar_lea.vmem %s5120_s4, %s2888_s16  ;;  %s3414_s25 = scalar_lea.vmem %s4986_s6, %s2888_s16 }
  0x15   : > { %s3423_s13 = scalar_lea.vmem %s4988_s8, %s2888_s16  ;;  %s2819_s21 = sshll.u32 %s3399_s15, 3 }
  0x16   : > { %s3433_s23 = scalar_lea.vmem %s4990_s10, %s2819_s21 }
  0x19   : > { %v557_v0 = vld [vmem:[%s4980_s0] sm:$0x3]  ;;  %v558_v1 = vld [vmem:[%s4980_s0 + $0x2] sm:$0x3]  ;;  %v559_v2 = vld [vmem:[%s4980_s0 + $0x4] sm:$0x3] }
  0x1a   : > { %v560_v3 = vld [vmem:[%s4980_s0 + $0x6] sm:$0x3]  ;;  %v561_v4 = vld [vmem:[%s4980_s0 + $0x8] sm:$0x3]  ;;  %v562_v5 = vld [vmem:[%s4980_s0 + $0xa] sm:$0x3] }
  0x1b   : > { %v563_v6 = vld [vmem:[%s4980_s0 + $0xc] sm:$0x3]  ;;  %v564_v7 = vld [vmem:[%s4980_s0 + $0xe] sm:$0x3]  ;;  %v565_v8 = vld [vmem:[%s4981_s1] sm:$0x3] }
  0x1c   : > { %v566_v9 = vld [vmem:[%s4981_s1 + $0x2] sm:$0x3]  ;;  %v567_v10 = vld [vmem:[%s4981_s1 + $0x4] sm:$0x3]  ;;  %v568_v11 = vld [vmem:[%s4981_s1 + $0x6] sm:$0x3]  ;;  %v701_v15 = vadd.f32 %v565_v8, %v557_v0 }
  0x1d   : > { %v569_v12 = vld [vmem:[%s4981_s1 + $0x8] sm:$0x3]  ;;  %v570_v13 = vld [vmem:[%s4981_s1 + $0xa] sm:$0x3]  ;;  %v571_v14 = vld [vmem:[%s4981_s1 + $0xc] sm:$0x3]  ;;  %v702_v16 = vadd.f32 %v566_v9, %v558_v1  ;;  %v703_v17 = vadd.f32 %v567_v10, %v559_v2  ;;  %v704_v18 = vadd.f32 %v568_v11, %v560_v3 }
  0x1e   : > { %v572_v19 = vld [vmem:[%s4981_s1 + $0xe] sm:$0x3]  ;;  %v705_v20 = vadd.f32 %v569_v12, %v561_v4  ;;  %v706_v21 = vadd.f32 %v570_v13, %v562_v5  ;;  %v3484_v22 = vadd.f32 %v571_v14, %v563_v6  ;;  %vm718_vm0 = vcmask 1041409   ;;  %v3493_v31 = vld [vmem:[%s4982_s2] sm:$0x3] }
  0x1f   : > { %v3486_v23 = vadd.f32 %v572_v19, %v564_v7  ;;  %v717_v24 = vrot.slane %v702_v16, 7  ;;  %v720_v25 = vrot.slane %v703_v17, 6  ;;  %vm721_vm1 = vcmask 1042434   ;;  %5121 = vst [vmem:[#allocation10_spill] sm:$0xff] %v3493_v31  ;;  %v3500_v34 = vld [vmem:[%s4982_s2 + $0x2] sm:$0x3] }
  0x20   : > { %v723_v26 = vrot.slane %v704_v18, 5  ;;  %vm724_vm2 = vcmask 1043459   ;;  %v726_v27 = vrot.slane %v705_v20, 4  ;;  %vm727_vm3 = vcmask 1044484   ;;  %5122 = vst [vmem:[#allocation11_spill] sm:$0xff] %v3500_v34 }
  0x21   : > { %v719_v28 = vsel %vm718_vm0, %v717_v24, %v701_v15  ;;  %v729_v29 = vrot.slane %v706_v21, 3  ;;  %vm730_vm4 = vcmask 1045509   ;;  %v732_v30 = vrot.slane %v3484_v22, 2  ;;  %v3505_v35 = vld [vmem:[%s4982_s2 + $0x4] sm:$0x3] }
  0x22   : > { %v722_v32 = vsel %vm721_vm1, %v720_v25, %v719_v28  ;;  %vm733_vm5 = vcmask 1046534   ;;  %v735_v33 = vrot.slane %v3486_v23, 1  ;;  %vm736_vm6 = vcmask 1047559   ;;  %5123 = vst [vmem:[#allocation12_spill] sm:$0xff] %v3505_v35  ;;  %v3511_v39 = vld [vmem:[%s4982_s2 + $0x6] sm:$0x3] }
  0x23   : > { %v725_v36 = vsel %vm724_vm2, %v723_v26, %v722_v32  ;;  %vm754_vm7 = vcmask 261120   ;;  %v739_v37 = vrot.slane %v701_v15, 1  ;;  %v741_v38 = vrot.slane %v703_v17, 7  ;;  %5124 = vst [vmem:[#allocation13_spill] sm:$0xff] %v3511_v39  ;;  %v3516_v40 = vld [vmem:[%s4982_s2 + $0x8] sm:$0x3] }
  0x24   : > { %5125 = vst [vmem:[#allocation14_spill] sm:$0xff] %v3516_v40  ;;  %v3521_v41 = vld [vmem:[%s4982_s2 + $0xa] sm:$0x3]  ;;  %v728_v42 = vsel %vm727_vm3, %v726_v27, %v725_v36  ;;  %v743_v43 = vrot.slane %v704_v18, 6  ;;  %v745_v44 = vrot.slane %v705_v20, 5  ;;  %v747_v45 = vrot.slane %v706_v21, 4 }
  0x25   : > { %5126 = vst [vmem:[#allocation15_spill] sm:$0xff] %v3521_v41  ;;  %v3527_v46 = vld [vmem:[%s4982_s2 + $0xc] sm:$0x3]  ;;  %v731_v47 = vsel %vm730_vm4, %v729_v29, %v728_v42  ;;  %v740_v48 = vsel %vm718_vm0, %v702_v16, %v739_v37  ;;  %v749_v49 = vrot.slane %v3484_v22, 3  ;;  %v751_v50 = vrot.slane %v3486_v23, 2 }
  0x26   : > { %5127 = vst [vmem:[#allocation16_spill] sm:$0xff] %v3527_v46  ;;  %v3536_v51 = vld [vmem:[%s4982_s2 + $0xe] sm:$0x3]  ;;  %v637_v52 = vld [vmem:[%s4983_s3] sm:$0x3]  ;;  %v734_v53 = vsel %vm733_vm5, %v732_v30, %v731_v47  ;;  %v742_v54 = vsel %vm721_vm1, %v741_v38, %v740_v48 }
  0x27   : > { %5128 = vst [vmem:[#allocation17_spill] sm:$0xff] %v3536_v51  ;;  %v638_v55 = vld [vmem:[%s4983_s3 + $0x2] sm:$0x3]  ;;  %v639_v56 = vld [vmem:[%s4983_s3 + $0x4] sm:$0x3]  ;;  %v3553_v58 = vadd.f32 %v637_v52, %v3493_v31  ;;  %v737_v59 = vsel %vm736_vm6, %v735_v33, %v734_v53  ;;  %v744_v60 = vsel %vm724_vm2, %v743_v43, %v742_v54 }
  0x28   : > { %v640_v57 = vld [vmem:[%s4983_s3 + $0x6] sm:$0x3]  ;;  %v641_v61 = vld [vmem:[%s4983_s3 + $0x8] sm:$0x3]  ;;  %v642_v62 = vld [vmem:[%s4983_s3 + $0xa] sm:$0x3]  ;;  %v3567_v0 = vadd.f32 %v638_v55, %v3500_v34  ;;  %v3570_v1 = vadd.f32 %v639_v56, %v3505_v35  ;;  %v746_v2 = vsel %vm727_vm3, %v745_v44, %v744_v60 }
  0x29   : > { %v643_v63 = vld [vmem:[%s4983_s3 + $0xc] sm:$0x3]  ;;  %755 = vst.msk [vmem:[#allocation2] sm:$0xff] %vm754_vm7, %v737_v59  ;;  %v644_v3 = vld [vmem:[%s4983_s3 + $0xe] sm:$0x3]  ;;  %v3578_v4 = vadd.f32 %v640_v57, %v3511_v39  ;;  %v3581_v5 = vadd.f32 %v641_v61, %v3516_v40  ;;  %v3584_v6 = vadd.f32 %v642_v62, %v3521_v41  ;;  %v748_v8 = vsel %vm730_vm4, %v747_v45, %v746_v2 }
  0x2a   : > { %v3589_v7 = vld [vmem:[%s4982_s2 + $0x10] sm:$0x3]  ;;  %v3593_v9 = vadd.f32 %v643_v63, %v3527_v46  ;;  %v3596_v10 = vadd.f32 %v644_v3, %v3536_v51  ;;  %v885_v11 = vrot.slane %v3567_v0, 7  ;;  %v3602_v12 = vld [vmem:[%s4982_s2 + $0x12] sm:$0x3]  ;;  %v750_v15 = vsel %vm733_vm5, %v749_v49, %v748_v8 }
  0x2b   : > { %5129 = vst [vmem:[#allocation18_spill] sm:$0xff] %v3589_v7  ;;  %5130 = vst [vmem:[#allocation19_spill] sm:$0xff] %v3602_v12  ;;  %v3607_v13 = vld [vmem:[%s4982_s2 + $0x14] sm:$0x3]  ;;  %v3612_v14 = vld [vmem:[%s4982_s2 + $0x16] sm:$0x3]  ;;  %v752_v20 = vsel %vm736_vm6, %v751_v50, %v750_v15 }
  0x2c   : > { %5131 = vst [vmem:[#allocation20_spill] sm:$0xff] %v3607_v13  ;;  %5132 = vst [vmem:[#allocation21_spill] sm:$0xff] %v3612_v14  ;;  %v887_v16 = vrot.slane %v3570_v1, 6  ;;  %v889_v17 = vrot.slane %v3578_v4, 5  ;;  %v891_v18 = vrot.slane %v3581_v5, 4  ;;  %v886_v21 = vsel %vm718_vm0, %v885_v11, %v3553_v58 }
  0x2d   : > { %v3621_v19 = vld [vmem:[%s4982_s2 + $0x18] sm:$0x3]  ;;  %v893_v22 = vrot.slane %v3584_v6, 3  ;;  %v895_v23 = vrot.slane %v3593_v9, 2  ;;  %v3631_v24 = vld [vmem:[%s4982_s2 + $0x1a] sm:$0x3] }
  0x2e   : > { %5133 = vst [vmem:[#allocation22_spill] sm:$0xff] %v3621_v19  ;;  %5134 = vst [vmem:[#allocation23_spill] sm:$0xff] %v3631_v24  ;;  %v3636_v25 = vld [vmem:[%s4982_s2 + $0x1c] sm:$0x3]  ;;  %v888_v26 = vsel %vm721_vm1, %v887_v16, %v886_v21  ;;  %v897_v27 = vrot.slane %v3596_v10, 1  ;;  %v1005_v30 = vrot.slane %v3553_v58, 1 }
  0x2f   : > { %5135 = vst [vmem:[#allocation24_spill] sm:$0xff] %v3636_v25  ;;  %756 = vst.msk [vmem:[#allocation2 + $0x8] sm:$0xff] %vm754_vm7, %v752_v20  ;;  %v3644_v28 = vld [vmem:[%s4982_s2 + $0x1e] sm:$0x3]  ;;  %v645_v29 = vld [vmem:[%s4983_s3 + $0x10] sm:$0x3]  ;;  %v890_v32 = vsel %vm724_vm2, %v889_v17, %v888_v26 }
  0x30   : > { %5136 = vst [vmem:[#allocation25_spill] sm:$0xff] %v3644_v28  ;;  %v646_v33 = vld [vmem:[%s4983_s3 + $0x12] sm:$0x3]  ;;  %v647_v36 = vld [vmem:[%s4983_s3 + $0x14] sm:$0x3]  ;;  %v3661_v38 = vadd.f32 %v645_v29, %v3589_v7  ;;  %v892_v42 = vsel %vm727_vm3, %v891_v18, %v890_v32 }
  0x31   : > { %v648_v37 = vld [vmem:[%s4983_s3 + $0x16] sm:$0x3]  ;;  %v649_v43 = vld [vmem:[%s4983_s3 + $0x18] sm:$0x3]  ;;  %v650_v44 = vld [vmem:[%s4983_s3 + $0x1a] sm:$0x3]  ;;  %v3674_v47 = vadd.f32 %v646_v33, %v3602_v12  ;;  %v3677_v48 = vadd.f32 %v647_v36, %v3607_v13  ;;  %v894_v50 = vsel %vm730_vm4, %v893_v22, %v892_v42 }
  0x32   : > { %v651_v45 = vld [vmem:[%s4983_s3 + $0x1c] sm:$0x3]  ;;  %v3680_v49 = vadd.f32 %v648_v37, %v3612_v14  ;;  %v652_v52 = vld [vmem:[%s4983_s3 + $0x1e] sm:$0x3]  ;;  %v3687_v53 = vadd.f32 %v649_v43, %v3621_v19  ;;  %v3690_v54 = vadd.f32 %v650_v44, %v3631_v24  ;;  %v3698_v56 = vld [vmem:[%s4982_s2 + $0x20] sm:$0x3]  ;;  %v896_v58 = vsel %vm733_vm5, %v895_v23, %v894_v50 }
  0x33   : > { %v3693_v55 = vadd.f32 %v651_v45, %v3636_v25  ;;  %5137 = vst [vmem:[#allocation26_spill] sm:$0xff] %v3698_v56  ;;  %v3703_v57 = vld [vmem:[%s4982_s2 + $0x22] sm:$0x3]  ;;  %v3707_v59 = vadd.f32 %v652_v52, %v3644_v28  ;;  %v899_v60 = vrot.slane %v3674_v47, 7  ;;  %v901_v61 = vrot.slane %v3677_v48, 6 }
  0x34   : > { %5138 = vst [vmem:[#allocation27_spill] sm:$0xff] %v3703_v57  ;;  %v3714_v62 = vld [vmem:[%s4982_s2 + $0x24] sm:$0x3]  ;;  %v3719_v63 = vld [vmem:[%s4982_s2 + $0x26] sm:$0x3]  ;;  %v898_v2 = vsel %vm736_vm6, %v897_v27, %v896_v58  ;;  %v903_v3 = vrot.slane %v3680_v49, 5  ;;  %v1006_v43 = vsel %vm718_vm0, %v3567_v0, %v1005_v30 }
  0x35   : > { %5139 = vst [vmem:[#allocation28_spill] sm:$0xff] %v3714_v62  ;;  %5140 = vst [vmem:[#allocation29_spill] sm:$0xff] %v3719_v63  ;;  %v905_v8 = vrot.slane %v3687_v53, 4  ;;  %v907_v11 = vrot.slane %v3690_v54, 3  ;;  %v3728_v15 = vld [vmem:[%s4982_s2 + $0x28] sm:$0x3]  ;;  %v900_v16 = vsel %vm718_vm0, %v899_v60, %v3661_v38 }
  0x36   : > { %5141 = vst [vmem:[#allocation30_spill] sm:$0xff] %v3728_v15  ;;  %1125 = vst.msk [vmem:[#allocation3] sm:$0xff] %vm754_vm7, %v898_v2  ;;  %v909_v17 = vrot.slane %v3693_v55, 2  ;;  %v911_v18 = vrot.slane %v3707_v59, 1  ;;  %v3738_v20 = vld [vmem:[%s4982_s2 + $0x2a] sm:$0x3]  ;;  %v902_v22 = vsel %vm721_vm1, %v901_v61, %v900_v16 }
  0x37   : > { %5142 = vst [vmem:[#allocation31_spill] sm:$0xff] %v3738_v20  ;;  %v3743_v21 = vld [vmem:[%s4982_s2 + $0x2c] sm:$0x3]  ;;  %v3749_v23 = vld [vmem:[%s4982_s2 + $0x2e] sm:$0x3]  ;;  %v904_v29 = vsel %vm724_vm2, %v903_v3, %v902_v22 }
  0x38   : > { %5143 = vst [vmem:[#allocation32_spill] sm:$0xff] %v3743_v21  ;;  %5144 = vst [vmem:[#allocation33_spill] sm:$0xff] %v3749_v23  ;;  %v653_v26 = vld [vmem:[%s4983_s3 + $0x20] sm:$0x3]  ;;  %v654_v27 = vld [vmem:[%s4983_s3 + $0x22] sm:$0x3]  ;;  %v906_v44 = vsel %vm727_vm3, %v905_v8, %v904_v29 }
  0x39   : > { %v655_v32 = vld [vmem:[%s4983_s3 + $0x24] sm:$0x3]  ;;  %v656_v33 = vld [vmem:[%s4983_s3 + $0x26] sm:$0x3]  ;;  %v657_v36 = vld [vmem:[%s4983_s3 + $0x28] sm:$0x3]  ;;  %v3768_v37 = vadd.f32 %v653_v26, %v3698_v56  ;;  %v3771_v42 = vadd.f32 %v654_v27, %v3703_v57  ;;  %v908_v30 = vsel %vm730_vm4, %v907_v11, %v906_v44 }
  0x3a   : > { %v658_v45 = vld [vmem:[%s4983_s3 + $0x2a] sm:$0x3]  ;;  %v659_v50 = vld [vmem:[%s4983_s3 + $0x2c] sm:$0x3]  ;;  %v660_v52 = vld [vmem:[%s4983_s3 + $0x2e] sm:$0x3]  ;;  %v3786_v58 = vadd.f32 %v655_v32, %v3714_v62  ;;  %v3789_v60 = vadd.f32 %v656_v33, %v3719_v63  ;;  %v3792_v0 = vadd.f32 %v657_v36, %v3728_v15  ;;  %v910_v11 = vsel %vm733_vm5, %v909_v17, %v908_v30 }
  0x3b   : > { %v3796_v61 = vadd.f32 %v658_v45, %v3738_v20  ;;  %v3799_v2 = vadd.f32 %v659_v50, %v3743_v21  ;;  %v3802_v3 = vadd.f32 %v660_v52, %v3749_v23  ;;  %v3807_v8 = vld [vmem:[%s4982_s2 + $0x30] sm:$0x3]  ;;  %v3812_v16 = vld [vmem:[%s4982_s2 + $0x32] sm:$0x3]  ;;  %v913_v22 = vrot.slane %v3771_v42, 7 }
  0x3c   : > { %5145 = vst [vmem:[#allocation34_spill] sm:$0xff] %v3807_v8  ;;  %5146 = vst [vmem:[#allocation35_spill] sm:$0xff] %v3812_v16  ;;  %v915_v26 = vrot.slane %v3786_v58, 6  ;;  %v917_v27 = vrot.slane %v3789_v60, 5  ;;  %v3821_v29 = vld [vmem:[%s4982_s2 + $0x34] sm:$0x3]  ;;  %v912_v33 = vsel %vm736_vm6, %v911_v18, %v910_v11 }
  0x3d   : > { %5147 = vst [vmem:[#allocation36_spill] sm:$0xff] %v3821_v29  ;;  %v3826_v32 = vld [vmem:[%s4982_s2 + $0x36] sm:$0x3]  ;;  %v919_v17 = vrot.slane %v3792_v0, 4  ;;  %v921_v36 = vrot.slane %v3796_v61, 3  ;;  %v923_v44 = vrot.slane %v3799_v2, 2  ;;  %v914_v50 = vsel %vm718_vm0, %v913_v22, %v3768_v37 }
  0x3e   : > { %5148 = vst [vmem:[#allocation37_spill] sm:$0xff] %v3826_v32  ;;  %v3835_v45 = vld [vmem:[%s4982_s2 + $0x38] sm:$0x3]  ;;  %1126 = vst.msk [vmem:[#allocation3 + $0x8] sm:$0xff] %vm754_vm7, %v912_v33  ;;  %v925_v52 = vrot.slane %v3802_v3, 1  ;;  %v1007_v11 = vrot.slane %v3570_v1, 7  ;;  %v916_v23 = vsel %vm721_vm1, %v915_v26, %v914_v50 }
  0x3f   : > { %5149 = vst [vmem:[#allocation38_spill] sm:$0xff] %v3835_v45  ;;  %v3844_v18 = vld [vmem:[%s4982_s2 + $0x3a] sm:$0x3]  ;;  %v3849_v30 = vld [vmem:[%s4982_s2 + $0x3c] sm:$0x3]  ;;  %v918_v20 = vsel %vm724_vm2, %v917_v27, %v916_v23 }
  0x40   : > { %5150 = vst [vmem:[#allocation39_spill] sm:$0xff] %v3844_v18  ;;  %5151 = vst [vmem:[#allocation40_spill] sm:$0xff] %v3849_v30  ;;  %v3856_v22 = vld [vmem:[%s4982_s2 + $0x3e] sm:$0x3]  ;;  %v661_v33 = vld [vmem:[%s4983_s3 + $0x30] sm:$0x3]  ;;  %v1008_v23 = vsel %vm721_vm1, %v1007_v11, %v1006_v43  ;;  %v920_v27 = vsel %vm727_vm3, %v919_v17, %v918_v20 }
  0x41   : > { %5152 = vst [vmem:[#allocation41_spill] sm:$0xff] %v3856_v22  ;;  %v662_v21 = vld [vmem:[%s4983_s3 + $0x32] sm:$0x3]  ;;  %v663_v1 = vld [vmem:[%s4983_s3 + $0x34] sm:$0x3]  ;;  %v3875_v15 = vadd.f32 %v661_v33, %v3807_v8  ;;  %v922_v43 = vsel %vm730_vm4, %v921_v36, %v920_v27 }
  0x42   : > { %v664_v26 = vld [vmem:[%s4983_s3 + $0x36] sm:$0x3]  ;;  %v665_v50 = vld [vmem:[%s4983_s3 + $0x38] sm:$0x3]  ;;  %v3878_v56 = vadd.f32 %v662_v21, %v3812_v16  ;;  %v666_v63 = vld [vmem:[%s4983_s3 + $0x3a] sm:$0x3]  ;;  %v3892_v8 = vadd.f32 %v663_v1, %v3821_v29  ;;  %v924_v36 = vsel %vm733_vm5, %v923_v44, %v922_v43 }
  0x43   : > { %v667_v62 = vld [vmem:[%s4983_s3 + $0x3c] sm:$0x3]  ;;  %v668_v33 = vld [vmem:[%s4983_s3 + $0x3e] sm:$0x3]  ;;  %v3895_v21 = vadd.f32 %v664_v26, %v3826_v32  ;;  %v3898_v20 = vadd.f32 %v665_v50, %v3835_v45  ;;  %v3902_v17 = vadd.f32 %v666_v63, %v3844_v18  ;;  %v3913_v1 = vld [vmem:[%s4982_s2 + $0x40] sm:$0x3] }
  0x44   : > { %v3905_v11 = vadd.f32 %v667_v62, %v3849_v30  ;;  %v3908_v16 = vadd.f32 %v668_v33, %v3856_v22  ;;  %5153 = vst [vmem:[#allocation42_spill] sm:$0xff] %v3913_v1  ;;  %v3918_v26 = vld [vmem:[%s4982_s2 + $0x42] sm:$0x3]  ;;  %v927_v63 = vrot.slane %v3878_v56, 7  ;;  %v929_v62 = vrot.slane %v3892_v8, 6 }
  0x45   : > { %5154 = vst [vmem:[#allocation43_spill] sm:$0xff] %v3918_v26  ;;  %v931_v50 = vrot.slane %v3895_v21, 5  ;;  %v3927_v27 = vld [vmem:[%s4982_s2 + $0x44] sm:$0x3]  ;;  %v3932_v33 = vld [vmem:[%s4982_s2 + $0x46] sm:$0x3]  ;;  %v926_v22 = vsel %vm736_vm6, %v925_v52, %v924_v36 }
  0x46   : > { %5155 = vst [vmem:[#allocation44_spill] sm:$0xff] %v3927_v27  ;;  %5156 = vst [vmem:[#allocation45_spill] sm:$0xff] %v3932_v33  ;;  %v933_v44 = vrot.slane %v3898_v20, 4  ;;  %v935_v43 = vrot.slane %v3902_v17, 3  ;;  %v937_v30 = vrot.slane %v3905_v11, 2  ;;  %v928_v45 = vsel %vm718_vm0, %v927_v63, %v3875_v15 }
  0x47   : > { %v3941_v18 = vld [vmem:[%s4982_s2 + $0x48] sm:$0x3]  ;;  %1127 = vst.msk [vmem:[#allocation3 + $0x10] sm:$0xff] %vm754_vm7, %v926_v22  ;;  %v939_v32 = vrot.slane %v3908_v16, 1  ;;  %v3950_v52 = vld [vmem:[%s4982_s2 + $0x4a] sm:$0x3]  ;;  %v930_v57 = vsel %vm721_vm1, %v929_v62, %v928_v45 }
  0x48   : > { %5157 = vst [vmem:[#allocation46_spill] sm:$0xff] %v3941_v18  ;;  %5158 = vst [vmem:[#allocation47_spill] sm:$0xff] %v3950_v52  ;;  %v3955_v36 = vld [vmem:[%s4982_s2 + $0x4c] sm:$0x3]  ;;  %v1009_v29 = vrot.slane %v3578_v4, 6  ;;  %v932_v25 = vsel %vm724_vm2, %v931_v50, %v930_v57 }
  0x49   : > { %5159 = vst [vmem:[#allocation48_spill] sm:$0xff] %v3955_v36  ;;  %v3962_v22 = vld [vmem:[%s4982_s2 + $0x4e] sm:$0x3]  ;;  %v669_v63 = vld [vmem:[%s4983_s3 + $0x40] sm:$0x3]  ;;  %v934_v50 = vsel %vm727_vm3, %v933_v44, %v932_v25 }
  0x4a   : > { %5160 = vst [vmem:[#allocation49_spill] sm:$0xff] %v3962_v22  ;;  %v670_v28 = vld [vmem:[%s4983_s3 + $0x42] sm:$0x3]  ;;  %v671_v4 = vld [vmem:[%s4983_s3 + $0x44] sm:$0x3]  ;;  %v3981_v24 = vadd.f32 %v669_v63, %v3913_v1  ;;  %v1010_v57 = vsel %vm724_vm2, %v1009_v29, %v1008_v23  ;;  %v936_v29 = vsel %vm730_vm4, %v935_v43, %v934_v50 }
  0x4b   : > { %v672_v45 = vld [vmem:[%s4983_s3 + $0x46] sm:$0x3]  ;;  %v673_v62 = vld [vmem:[%s4983_s3 + $0x48] sm:$0x3]  ;;  %v3984_v19 = vadd.f32 %v670_v28, %v3918_v26  ;;  %v674_v7 = vld [vmem:[%s4983_s3 + $0x4a] sm:$0x3]  ;;  %v3998_v1 = vadd.f32 %v671_v4, %v3927_v27  ;;  %v938_v43 = vsel %vm733_vm5, %v937_v30, %v936_v29 }
  0x4c   : > { %v675_v14 = vld [vmem:[%s4983_s3 + $0x4c] sm:$0x3]  ;;  %v676_v63 = vld [vmem:[%s4983_s3 + $0x4e] sm:$0x3]  ;;  %v4001_v28 = vadd.f32 %v672_v45, %v3932_v33  ;;  %v4004_v25 = vadd.f32 %v673_v62, %v3941_v18  ;;  %v4008_v23 = vadd.f32 %v674_v7, %v3950_v52  ;;  %v4019_v4 = vld [vmem:[%s4982_s2 + $0x50] sm:$0x3] }
  0x4d   : > { %v4011_v44 = vadd.f32 %v675_v14, %v3955_v36  ;;  %v4014_v26 = vadd.f32 %v676_v63, %v3962_v22  ;;  %5161 = vst [vmem:[#allocation50_spill] sm:$0xff] %v4019_v4  ;;  %v4024_v45 = vld [vmem:[%s4982_s2 + $0x52] sm:$0x3]  ;;  %v941_v7 = vrot.slane %v3984_v19, 7  ;;  %v943_v14 = vrot.slane %v3998_v1, 6 }
  0x4e   : > { %5162 = vst [vmem:[#allocation51_spill] sm:$0xff] %v4024_v45  ;;  %v945_v62 = vrot.slane %v4001_v28, 5  ;;  %v4033_v50 = vld [vmem:[%s4982_s2 + $0x54] sm:$0x3]  ;;  %v4038_v63 = vld [vmem:[%s4982_s2 + $0x56] sm:$0x3]  ;;  %v940_v22 = vsel %vm736_vm6, %v939_v32, %v938_v43 }
  0x4f   : > { %5163 = vst [vmem:[#allocation52_spill] sm:$0xff] %v4033_v50  ;;  %5164 = vst [vmem:[#allocation53_spill] sm:$0xff] %v4038_v63  ;;  %v947_v30 = vrot.slane %v4004_v25, 4  ;;  %v949_v29 = vrot.slane %v4008_v23, 3  ;;  %v951_v36 = vrot.slane %v4011_v44, 2  ;;  %v942_v18 = vsel %vm718_vm0, %v941_v7, %v3981_v24 }
  0x50   : > { %v4047_v52 = vld [vmem:[%s4982_s2 + $0x58] sm:$0x3]  ;;  %1128 = vst.msk [vmem:[#allocation3 + $0x18] sm:$0xff] %vm754_vm7, %v940_v22  ;;  %v953_v33 = vrot.slane %v4014_v26, 1  ;;  %v4056_v32 = vld [vmem:[%s4982_s2 + $0x5a] sm:$0x3]  ;;  %v944_v13 = vsel %vm721_vm1, %v943_v14, %v942_v18 }
  0x51   : > { %5165 = vst [vmem:[#allocation54_spill] sm:$0xff] %v4047_v52  ;;  %5166 = vst [vmem:[#allocation55_spill] sm:$0xff] %v4056_v32  ;;  %v4061_v43 = vld [vmem:[%s4982_s2 + $0x5c] sm:$0x3]  ;;  %v1011_v27 = vrot.slane %v3581_v5, 5  ;;  %v946_v51 = vsel %vm724_vm2, %v945_v62, %v944_v13 }
  0x52   : > { %5167 = vst [vmem:[#allocation56_spill] sm:$0xff] %v4061_v43  ;;  %v4068_v22 = vld [vmem:[%s4982_s2 + $0x5e] sm:$0x3]  ;;  %v677_v7 = vld [vmem:[%s4983_s3 + $0x50] sm:$0x3]  ;;  %v948_v62 = vsel %vm727_vm3, %v947_v30, %v946_v51 }
  0x53   : > { %5168 = vst [vmem:[#allocation57_spill] sm:$0xff] %v4068_v22  ;;  %v678_v12 = vld [vmem:[%s4983_s3 + $0x52] sm:$0x3]  ;;  %v679_v5 = vld [vmem:[%s4983_s3 + $0x54] sm:$0x3]  ;;  %v4087_v46 = vadd.f32 %v677_v7, %v4019_v4  ;;  %v1012_v13 = vsel %vm727_vm3, %v1011_v27, %v1010_v57  ;;  %v950_v27 = vsel %vm730_vm4, %v949_v29, %v948_v62 }
  0x54   : > { %v680_v18 = vld [vmem:[%s4983_s3 + $0x56] sm:$0x3]  ;;  %v681_v14 = vld [vmem:[%s4983_s3 + $0x58] sm:$0x3]  ;;  %v4090_v41 = vadd.f32 %v678_v12, %v4024_v45  ;;  %v682_v31 = vld [vmem:[%s4983_s3 + $0x5a] sm:$0x3]  ;;  %v4104_v4 = vadd.f32 %v679_v5, %v4033_v50  ;;  %v952_v29 = vsel %vm733_vm5, %v951_v36, %v950_v27 }
  0x55   : > { %v683_v40 = vld [vmem:[%s4983_s3 + $0x5c] sm:$0x3]  ;;  %v684_v7 = vld [vmem:[%s4983_s3 + $0x5e] sm:$0x3]  ;;  %v4107_v12 = vadd.f32 %v680_v18, %v4038_v63  ;;  %v4110_v51 = vadd.f32 %v681_v14, %v4047_v52  ;;  %v4114_v57 = vadd.f32 %v682_v31, %v4056_v32  ;;  %v4125_v5 = vld [vmem:[%s4982_s2 + $0x60] sm:$0x3] }
  0x56   : > { %v4117_v30 = vadd.f32 %v683_v40, %v4061_v43  ;;  %v4120_v45 = vadd.f32 %v684_v7, %v4068_v22  ;;  %5173 = vst [vmem:[#allocation62_spill] sm:$0xff] %v4125_v5  ;;  %v4130_v18 = vld [vmem:[%s4982_s2 + $0x62] sm:$0x3]  ;;  %v955_v31 = vrot.slane %v4090_v41, 7  ;;  %v957_v40 = vrot.slane %v4104_v4, 6 }
  0x57   : > { %5169 = vst [vmem:[#allocation58_spill] sm:$0xff] %v4110_v51  ;;  %5170 = vst [vmem:[#allocation59_spill] sm:$0xff] %v4114_v57  ;;  %v959_v14 = vrot.slane %v4107_v12, 5  ;;  %v4139_v62 = vld [vmem:[%s4982_s2 + $0x64] sm:$0x3]  ;;  %v954_v22 = vsel %vm736_vm6, %v953_v33, %v952_v29  ;;  %v961_v36 = vrot.slane %v4110_v51, 4 }
  0x58   : > { %5171 = vst [vmem:[#allocation60_spill] sm:$0xff] %v4117_v30  ;;  %5172 = vst [vmem:[#allocation61_spill] sm:$0xff] %v4120_v45  ;;  %v4144_v7 = vld [vmem:[%s4982_s2 + $0x66] sm:$0x3]  ;;  %v963_v27 = vrot.slane %v4114_v57, 3  ;;  %v965_v43 = vrot.slane %v4117_v30, 2  ;;  %v956_v52 = vsel %vm718_vm0, %v955_v31, %v4087_v46 }
  0x59   : > { %5174 = vst [vmem:[#allocation63_spill] sm:$0xff] %v4130_v18  ;;  %5175 = vst [vmem:[#allocation64_spill] sm:$0xff] %v4139_v62  ;;  %v4153_v32 = vld [vmem:[%s4982_s2 + $0x68] sm:$0x3]  ;;  %v967_v63 = vrot.slane %v4120_v45, 1  ;;  %v1013_v50 = vrot.slane %v3584_v6, 4  ;;  %v958_v39 = vsel %vm721_vm1, %v957_v40, %v956_v52 }
  0x5a   : > { %5176 = vst [vmem:[#allocation65_spill] sm:$0xff] %v4144_v7  ;;  %5177 = vst [vmem:[#allocation66_spill] sm:$0xff] %v4153_v32  ;;  %v4162_v33 = vld [vmem:[%s4982_s2 + $0x6a] sm:$0x3]  ;;  %v4167_v29 = vld [vmem:[%s4982_s2 + $0x6c] sm:$0x3]  ;;  %v960_v34 = vsel %vm724_vm2, %v959_v14, %v958_v39 }
  0x5b   : > { %1129 = vst.msk [vmem:[#allocation3 + $0x20] sm:$0xff] %vm754_vm7, %v954_v22  ;;  %5178 = vst [vmem:[#allocation67_spill] sm:$0xff] %v4162_v33  ;;  %v4174_v22 = vld [vmem:[%s4982_s2 + $0x6e] sm:$0x3]  ;;  %v685_v31 = vld [vmem:[%s4983_s3 + $0x60] sm:$0x3]  ;;  %v1014_v39 = vsel %vm730_vm4, %v1013_v50, %v1012_v13  ;;  %v962_v14 = vsel %vm727_vm3, %v961_v36, %v960_v34 }
  0x5c   : > { %5179 = vst [vmem:[#allocation68_spill] sm:$0xff] %v4167_v29  ;;  %5180 = vst [vmem:[#allocation69_spill] sm:$0xff] %v4174_v22  ;;  %v686_v35 = vld [vmem:[%s4983_s3 + $0x62] sm:$0x3]  ;;  %v687_v6 = vld [vmem:[%s4983_s3 + $0x64] sm:$0x3]  ;;  %v4193_v45 = vadd.f32 %v685_v31, %v4125_v5  ;;  %v964_v50 = vsel %vm730_vm4, %v963_v27, %v962_v14 }
  0x5d   : > { %v688_v52 = vld [vmem:[%s4983_s3 + $0x66] sm:$0x3]  ;;  %v689_v40 = vld [vmem:[%s4983_s3 + $0x68] sm:$0x3]  ;;  %v4196_v30 = vadd.f32 %v686_v35, %v4130_v18  ;;  %v690_v57 = vld [vmem:[%s4983_s3 + $0x6a] sm:$0x3]  ;;  %v4210_v5 = vadd.f32 %v687_v6, %v4139_v62  ;;  %v966_v27 = vsel %vm733_vm5, %v965_v43, %v964_v50 }
  0x5e   : > { %v691_v51 = vld [vmem:[%s4983_s3 + $0x6c] sm:$0x3]  ;;  %v692_v31 = vld [vmem:[%s4983_s3 + $0x6e] sm:$0x3]  ;;  %v4213_v35 = vadd.f32 %v688_v52, %v4144_v7  ;;  %v4216_v34 = vadd.f32 %v689_v40, %v4153_v32  ;;  %v4220_v13 = vadd.f32 %v690_v57, %v4162_v33  ;;  %v4231_v6 = vld [vmem:[%s4982_s2 + $0x70] sm:$0x3] }
  0x5f   : > { %5181 = vst [vmem:[#allocation70_spill] sm:$0xff] %v4196_v30  ;;  %5182 = vst [vmem:[#allocation71_spill] sm:$0xff] %v4210_v5  ;;  %v4223_v36 = vadd.f32 %v691_v51, %v4167_v29  ;;  %v4226_v18 = vadd.f32 %v692_v31, %v4174_v22  ;;  %v4236_v52 = vld [vmem:[%s4982_s2 + $0x72] sm:$0x3]  ;;  %v969_v57 = vrot.slane %v4196_v30, 7  ;;  %v971_v51 = vrot.slane %v4210_v5, 6 }
  0x60   : > { %5183 = vst [vmem:[#allocation72_spill] sm:$0xff] %v4213_v35  ;;  %5184 = vst [vmem:[#allocation73_spill] sm:$0xff] %v4216_v34  ;;  %v973_v40 = vrot.slane %v4213_v35, 5  ;;  %v4245_v14 = vld [vmem:[%s4982_s2 + $0x74] sm:$0x3]  ;;  %v968_v22 = vsel %vm736_vm6, %v967_v63, %v966_v27  ;;  %v975_v43 = vrot.slane %v4216_v34, 4 }
  0x61   : > { %5185 = vst [vmem:[#allocation74_spill] sm:$0xff] %v4220_v13  ;;  %5186 = vst [vmem:[#allocation75_spill] sm:$0xff] %v4223_v36  ;;  %v4250_v31 = vld [vmem:[%s4982_s2 + $0x76] sm:$0x3]  ;;  %v977_v50 = vrot.slane %v4220_v13, 3  ;;  %v979_v29 = vrot.slane %v4223_v36, 2  ;;  %v970_v32 = vsel %vm718_vm0, %v969_v57, %v4193_v45 }
  0x62   : > { %5187 = vst [vmem:[#allocation76_spill] sm:$0xff] %v4226_v18  ;;  %5188 = vst [vmem:[#allocation77_spill] sm:$0xff] %v4231_v6  ;;  %v4259_v33 = vld [vmem:[%s4982_s2 + $0x78] sm:$0x3]  ;;  %v981_v7 = vrot.slane %v4226_v18, 1  ;;  %v1015_v62 = vrot.slane %v3593_v9, 3  ;;  %v972_v36 = vsel %vm721_vm1, %v971_v51, %v970_v32 }
  0x63   : > { %5189 = vst [vmem:[#allocation78_spill] sm:$0xff] %v4236_v52  ;;  %5190 = vst [vmem:[#allocation79_spill] sm:$0xff] %v4245_v14  ;;  %v4268_v63 = vld [vmem:[%s4982_s2 + $0x7a] sm:$0x3]  ;;  %v4273_v27 = vld [vmem:[%s4982_s2 + $0x7c] sm:$0x3]  ;;  %v974_v13 = vsel %vm724_vm2, %v973_v40, %v972_v36 }
  0x64   : > { %5191 = vst [vmem:[#allocation80_spill] sm:$0xff] %v4250_v31  ;;  %5192 = vst [vmem:[#allocation81_spill] sm:$0xff] %v4259_v33  ;;  %v693_v57 = vld [vmem:[%s4983_s3 + $0x70] sm:$0x3]  ;;  %v694_v18 = vld [vmem:[%s4983_s3 + $0x72] sm:$0x3]  ;;  %v1016_v36 = vsel %vm733_vm5, %v1015_v62, %v1014_v39  ;;  %v976_v40 = vsel %vm727_vm3, %v975_v43, %v974_v13 }
  0x65   : > { %1130 = vst.msk [vmem:[#allocation3 + $0x28] sm:$0xff] %vm754_vm7, %v968_v22  ;;  %5193 = vst [vmem:[#allocation82_spill] sm:$0xff] %v4268_v63  ;;  %v4280_v22 = vld [vmem:[%s4982_s2 + $0x7e] sm:$0x3]  ;;  %v695_v9 = vld [vmem:[%s4983_s3 + $0x74] sm:$0x3]  ;;  %v4299_v34 = vadd.f32 %v693_v57, %v4231_v6  ;;  %v4302_v30 = vadd.f32 %v694_v18, %v4236_v52  ;;  %v978_v39 = vsel %vm730_vm4, %v977_v50, %v976_v40 }
  0x66   : > { %5194 = vst [vmem:[#allocation83_spill] sm:$0xff] %v4273_v27  ;;  %5195 = vst [vmem:[#allocation84_spill] sm:$0xff] %v4280_v22  ;;  %v696_v32 = vld [vmem:[%s4983_s3 + $0x76] sm:$0x3]  ;;  %v697_v51 = vld [vmem:[%s4983_s3 + $0x78] sm:$0x3]  ;;  %v4316_v6 = vadd.f32 %v695_v9, %v4245_v14  ;;  %v980_v9 = vsel %vm733_vm5, %v979_v29, %v978_v39 }
  0x67   : > { %v698_v35 = vld [vmem:[%s4983_s3 + $0x7a] sm:$0x3]  ;;  %v699_v5 = vld [vmem:[%s4983_s3 + $0x7c] sm:$0x3]  ;;  %v700_v57 = vld [vmem:[%s4983_s3 + $0x7e] sm:$0x3]  ;;  %v4319_v18 = vadd.f32 %v696_v32, %v4250_v31  ;;  %v4322_v62 = vadd.f32 %v697_v51, %v4259_v33  ;;  %v982_v33 = vsel %vm736_vm6, %v981_v7, %v980_v9 }
  0x68   : > { %v4326_v13 = vadd.f32 %v698_v35, %v4268_v63  ;;  %v4329_v43 = vadd.f32 %v699_v5, %v4273_v27  ;;  %v4332_v52 = vadd.f32 %v700_v57, %v4280_v22  ;;  %v983_v14 = vrot.slane %v4302_v30, 7  ;;  %1131 = vst.msk [vmem:[#allocation3 + $0x30] sm:$0xff] %vm754_vm7, %v982_v33 }
  0x69   : > { %v985_v32 = vrot.slane %v4316_v6, 6  ;;  %v987_v51 = vrot.slane %v4319_v18, 5  ;;  %v989_v50 = vrot.slane %v4322_v62, 4  ;;  %v1017_v57 = vrot.slane %v3596_v10, 2 }
  0x6a   : > { %v991_v35 = vrot.slane %v4326_v13, 3  ;;  %v993_v5 = vrot.slane %v4329_v43, 2  ;;  %v984_v40 = vsel %vm718_vm0, %v983_v14, %v4299_v34  ;;  %v995_v29 = vrot.slane %v4332_v52, 1 }
  0x6b   : > { %v1019_v39 = vrot.slane %v3661_v38, 1  ;;  %v986_v22 = vsel %vm721_vm1, %v985_v32, %v984_v40  ;;  %v1021_v7 = vrot.slane %v3677_v48, 7  ;;  %v1023_v9 = vrot.slane %v3680_v49, 6 }
  0x6c   : > { %v1025_v27 = vrot.slane %v3687_v53, 5  ;;  %v988_v63 = vsel %vm724_vm2, %v987_v51, %v986_v22  ;;  %v1018_v33 = vsel %vm736_vm6, %v1017_v57, %v1016_v36  ;;  %v1027_v31 = vrot.slane %v3690_v54, 4 }
  0x6d   : > { %v1020_v14 = vsel %vm718_vm0, %v3674_v47, %v1019_v39  ;;  %v990_v10 = vsel %vm727_vm3, %v989_v50, %v988_v63  ;;  %1133 = vst.msk [vmem:[#allocation3 + $0x40] sm:$0xff] %vm754_vm7, %v1018_v33  ;;  %v1029_v48 = vrot.slane %v3693_v55, 3  ;;  %v1031_v49 = vrot.slane %v3707_v59, 2 }
  0x6e   : > { %v1022_v38 = vsel %vm721_vm1, %v1021_v7, %v1020_v14  ;;  %v992_v53 = vsel %vm730_vm4, %v991_v35, %v990_v10  ;;  %v1033_v36 = vrot.slane %v3768_v37, 1  ;;  %v1035_v47 = vrot.slane %v3786_v58, 7 }
  0x6f   : > { %v1024_v22 = vsel %vm724_vm2, %v1023_v9, %v1022_v38  ;;  %v994_v54 = vsel %vm733_vm5, %v993_v5, %v992_v53  ;;  %v1037_v32 = vrot.slane %v3789_v60, 6  ;;  %v1039_v51 = vrot.slane %v3792_v0, 5 }
  0x70   : > { %v1026_v63 = vsel %vm727_vm3, %v1025_v27, %v1024_v22  ;;  %v996_v55 = vsel %vm736_vm6, %v995_v29, %v994_v54  ;;  %v1034_v50 = vsel %vm718_vm0, %v3771_v42, %v1033_v36  ;;  %v1041_v35 = vrot.slane %v3796_v61, 4  ;;  %v5196_v22 = vld [vmem:[#allocation58_spill] sm:$0xff] }
  0x71   : > { %v1028_v59 = vsel %vm730_vm4, %v1027_v31, %v1026_v63  ;;  %1132 = vst.msk [vmem:[#allocation3 + $0x38] sm:$0xff] %vm754_vm7, %v996_v55  ;;  %v1036_v58 = vsel %vm721_vm1, %v1035_v47, %v1034_v50  ;;  %v1043_v27 = vrot.slane %v3799_v2, 3  ;;  %v1045_v60 = vrot.slane %v3802_v3, 2  ;;  %v5197_v47 = vld [vmem:[#allocation59_spill] sm:$0xff] }
  0x72   : > { %v1030_v37 = vsel %vm733_vm5, %v1029_v48, %v1028_v59  ;;  %v1038_v5 = vsel %vm724_vm2, %v1037_v32, %v1036_v58  ;;  %v1047_v31 = vrot.slane %v3875_v15, 1  ;;  %v1049_v42 = vrot.slane %v3892_v8, 7  ;;  %v5201_v58 = vld [vmem:[#allocation72_spill] sm:$0xff] }
  0x73   : > { %v1032_v0 = vsel %vm736_vm6, %v1031_v49, %v1030_v37  ;;  %v1040_v61 = vsel %vm727_vm3, %v1039_v51, %v1038_v5  ;;  %v1051_v40 = vrot.slane %v3895_v21, 6  ;;  %v1053_v29 = vrot.slane %v3898_v20, 5  ;;  %v5199_v51 = vld [vmem:[#allocation61_spill] sm:$0xff] }
  0x74   : > { %1134 = vst.msk [vmem:[#allocation3 + $0x48] sm:$0xff] %vm754_vm7, %v1032_v0  ;;  %v1055_v2 = vrot.slane %v3902_v17, 4  ;;  %v1042_v3 = vsel %vm730_vm4, %v1041_v35, %v1040_v61  ;;  %v1048_v57 = vsel %vm718_vm0, %v3878_v56, %v1047_v31  ;;  %v1057_v39 = vrot.slane %v3905_v11, 3  ;;  %v5200_v35 = vld [vmem:[#allocation71_spill] sm:$0xff]  ;;  %v5202_v0 = vld [vmem:[#allocation70_spill] sm:$0xff]  ;;  %v5203_v31 = vld [vmem:[#allocation73_spill] sm:$0xff] }
  0x75   : > { %v1059_v15 = vrot.slane %v3908_v16, 2  ;;  %v1044_v8 = vsel %vm733_vm5, %v1043_v27, %v1042_v3  ;;  %v1050_v7 = vsel %vm721_vm1, %v1049_v42, %v1048_v57  ;;  %v1061_v9 = vrot.slane %v3981_v24, 1  ;;  %v5204_v61 = vld [vmem:[#allocation74_spill] sm:$0xff]  ;;  %v5206_v57 = vld [vmem:[#allocation76_spill] sm:$0xff] }
  0x76   : > { %v1063_v21 = vrot.slane %v3998_v1, 7  ;;  %v1046_v20 = vsel %vm736_vm6, %v1045_v60, %v1044_v8  ;;  %v1052_v17 = vsel %vm724_vm2, %v1051_v40, %v1050_v7  ;;  %v1065_v33 = vrot.slane %v4001_v28, 6 }
  0x77   : > { %v1067_v56 = vrot.slane %v4004_v25, 5  ;;  %1135 = vst.msk [vmem:[#allocation3 + $0x50] sm:$0xff] %vm754_vm7, %v1046_v20  ;;  %v1054_v16 = vsel %vm727_vm3, %v1053_v29, %v1052_v17  ;;  %v1062_v11 = vsel %vm718_vm0, %v3984_v19, %v1061_v9  ;;  %v1069_v14 = vrot.slane %v4008_v23, 4 }
  0x78   : > { %v1071_v24 = vrot.slane %v4011_v44, 3  ;;  %v1056_v1 = vsel %vm730_vm4, %v1055_v2, %v1054_v16  ;;  %v1064_v10 = vsel %vm721_vm1, %v1063_v21, %v1062_v11  ;;  %v1073_v38 = vrot.slane %v4014_v26, 2  ;;  %v5205_v2 = vld [vmem:[#allocation75_spill] sm:$0xff] }
  0x79   : > { %v1075_v28 = vrot.slane %v4087_v46, 1  ;;  %v1058_v25 = vsel %vm733_vm5, %v1057_v39, %v1056_v1  ;;  %v1066_v48 = vsel %vm724_vm2, %v1065_v33, %v1064_v10  ;;  %v1077_v49 = vrot.slane %v4104_v4, 7  ;;  %v5198_v4 = vld [vmem:[#allocation60_spill] sm:$0xff] }
  0x7a   : > { %v1079_v19 = vrot.slane %v4107_v12, 6  ;;  %v1060_v23 = vsel %vm736_vm6, %v1059_v15, %v1058_v25  ;;  %v1068_v44 = vsel %vm727_vm3, %v1067_v56, %v1066_v48  ;;  %v1081_v36 = vrot.slane %v5196_v22, 5  ;;  %v5210_v25 = vld [vmem:[#allocation14_spill] sm:$0xff] }
  0x7b   : > { %v1076_v53 = vsel %vm718_vm0, %v4090_v41, %v1075_v28  ;;  %1136 = vst.msk [vmem:[#allocation3 + $0x58] sm:$0xff] %vm754_vm7, %v1060_v23  ;;  %v1070_v46 = vsel %vm730_vm4, %v1069_v14, %v1068_v44  ;;  %v1083_v54 = vrot.slane %v5197_v47, 4  ;;  %v1085_v63 = vrot.slane %v5198_v4, 3  ;;  %v5213_v23 = vld [vmem:[#allocation16_spill] sm:$0xff] }
  0x7c   : > { %v1078_v26 = vsel %vm721_vm1, %v1077_v49, %v1076_v53  ;;  %v1072_v12 = vsel %vm733_vm5, %v1071_v24, %v1070_v46  ;;  %v1087_v55 = vrot.slane %v5199_v51, 2  ;;  %v1089_v41 = vrot.slane %v4193_v45, 1  ;;  %v5207_v24 = vld [vmem:[#allocation11_spill] sm:$0xff] }
  0x7d   : > { %v1080_v32 = vsel %vm724_vm2, %v1079_v19, %v1078_v26  ;;  %v1074_v59 = vsel %vm736_vm6, %v1073_v38, %v1072_v12  ;;  %v1091_v37 = vrot.slane %v5200_v35, 7  ;;  %v1093_v27 = vrot.slane %v5201_v58, 6  ;;  %v5209_v38 = vld [vmem:[#allocation13_spill] sm:$0xff]  ;;  %v5212_v49 = vld [vmem:[#allocation15_spill] sm:$0xff]  ;;  %v5219_v35 = vld [vmem:[#allocation22_spill] sm:$0xff] }
  0x7e   : > { %v1082_v50 = vsel %vm727_vm3, %v1081_v36, %v1080_v32  ;;  %1137 = vst.msk [vmem:[#allocation3 + $0x60] sm:$0xff] %vm754_vm7, %v1074_v59  ;;  %v1090_v5 = vsel %vm718_vm0, %v5202_v0, %v1089_v41  ;;  %v1095_v42 = vrot.slane %v5203_v31, 5  ;;  %v1097_v40 = vrot.slane %v5204_v61, 4  ;;  %v5214_v36 = vld [vmem:[#allocation17_spill] sm:$0xff]  ;;  %v5215_v26 = vld [vmem:[#allocation19_spill] sm:$0xff]  ;;  %v5218_v59 = vld [vmem:[#allocation18_spill] sm:$0xff] }
  0x7f   : > { %v1084_v60 = vsel %vm730_vm4, %v1083_v54, %v1082_v50  ;;  %v1092_v29 = vsel %vm721_vm1, %v1091_v37, %v1090_v5  ;;  %v1099_v3 = vrot.slane %v5205_v2, 3  ;;  %v1101_v39 = vrot.slane %v5206_v57, 2  ;;  %v5217_v32 = vld [vmem:[#allocation21_spill] sm:$0xff]  ;;  %v5221_v5 = vld [vmem:[#allocation24_spill] sm:$0xff] }
  0x80   : > { %v1086_v45 = vsel %vm733_vm5, %v1085_v63, %v1084_v60  ;;  %v1094_v8 = vsel %vm724_vm2, %v1093_v27, %v1092_v29  ;;  %v1103_v7 = vrot.slane %v4299_v34, 1  ;;  %v1105_v9 = vrot.slane %v4316_v6, 7  ;;  %v5216_v63 = vld [vmem:[#allocation20_spill] sm:$0xff]  ;;  %v5220_v60 = vld [vmem:[#allocation23_spill] sm:$0xff] }
  0x81   : > { %v1088_v15 = vsel %vm736_vm6, %v1087_v55, %v1086_v45  ;;  %v1096_v21 = vsel %vm727_vm3, %v1095_v42, %v1094_v8  ;;  %v1107_v20 = vrot.slane %v4319_v18, 6  ;;  %v1109_v17 = vrot.slane %v4322_v62, 5  ;;  %v5208_v18 = vld [vmem:[#allocation12_spill] sm:$0xff]  ;;  %v5223_v29 = vld [vmem:[#allocation27_spill] sm:$0xff]  ;;  %v5225_v8 = vld [vmem:[#allocation29_spill] sm:$0xff] }
  0x82   : > { %1138 = vst.msk [vmem:[#allocation3 + $0x68] sm:$0xff] %vm754_vm7, %v1088_v15  ;;  %v1111_v33 = vrot.slane %v4326_v13, 4  ;;  %v1098_v56 = vsel %vm730_vm4, %v1097_v40, %v1096_v21  ;;  %v1104_v16 = vsel %vm718_vm0, %v4302_v30, %v1103_v7  ;;  %v1113_v11 = vrot.slane %v4329_v43, 3  ;;  %v5211_v43 = vld [vmem:[#allocation10_spill] sm:$0xff]  ;;  %v5222_v40 = vld [vmem:[#allocation25_spill] sm:$0xff] }
  0x83   : > { %v1115_v34 = vrot.slane %v4332_v52, 2  ;;  %v1100_v6 = vsel %vm733_vm5, %v1099_v3, %v1098_v56  ;;  %v1106_v14 = vsel %vm721_vm1, %v1105_v9, %v1104_v16  ;;  %v1205_v1 = vrot.slane %v5207_v24, 7  ;;  %v5226_v21 = vld [vmem:[#allocation26_spill] sm:$0xff]  ;;  %v5228_v56 = vld [vmem:[#allocation31_spill] sm:$0xff]  ;;  %v5230_v24 = vld [vmem:[#allocation33_spill] sm:$0xff] }
  0x84   : > { %v1207_v10 = vrot.slane %v5208_v18, 6  ;;  %v1102_v62 = vsel %vm736_vm6, %v1101_v39, %v1100_v6  ;;  %v1108_v13 = vsel %vm724_vm2, %v1107_v20, %v1106_v14  ;;  %v1209_v28 = vrot.slane %v5209_v38, 5  ;;  %v5224_v39 = vld [vmem:[#allocation28_spill] sm:$0xff] }
  0x85   : > { %v1211_v30 = vrot.slane %v5210_v25, 4  ;;  %1139 = vst.msk [vmem:[#allocation3 + $0x70] sm:$0xff] %vm754_vm7, %v1102_v62  ;;  %v1110_v52 = vsel %vm727_vm3, %v1109_v17, %v1108_v13  ;;  %v1206_v48 = vsel %vm718_vm0, %v1205_v1, %v5211_v43  ;;  %v1213_v19 = vrot.slane %v5212_v49, 3  ;;  %v5227_v17 = vld [vmem:[#allocation30_spill] sm:$0xff]  ;;  %v5229_v6 = vld [vmem:[#allocation32_spill] sm:$0xff]  ;;  %v5231_v62 = vld [vmem:[#allocation35_spill] sm:$0xff] }
  0x86   : > { %v1215_v44 = vrot.slane %v5213_v23, 2  ;;  %v1112_v53 = vsel %vm730_vm4, %v1111_v33, %v1110_v52  ;;  %v1208_v22 = vsel %vm721_vm1, %v1207_v10, %v1206_v48  ;;  %v1217_v46 = vrot.slane %v5214_v36, 1  ;;  %v5232_v38 = vld [vmem:[#allocation36_spill] sm:$0xff]  ;;  %v5234_v43 = vld [vmem:[#allocation38_spill] sm:$0xff]  ;;  %v5235_v49 = vld [vmem:[#allocation39_spill] sm:$0xff] }
  0x87   : > { %v1219_v47 = vrot.slane %v5215_v26, 7  ;;  %v1114_v54 = vsel %vm733_vm5, %v1113_v11, %v1112_v53  ;;  %v1210_v4 = vsel %vm724_vm2, %v1209_v28, %v1208_v22  ;;  %v1221_v12 = vrot.slane %v5216_v63, 6  ;;  %v5237_v22 = vld [vmem:[#allocation40_spill] sm:$0xff] }
  0x88   : > { %v1223_v51 = vrot.slane %v5217_v32, 5  ;;  %v1116_v55 = vsel %vm736_vm6, %v1115_v34, %v1114_v54  ;;  %v1212_v41 = vsel %vm727_vm3, %v1211_v30, %v1210_v4  ;;  %v1225_v37 = vrot.slane %v5219_v35, 4  ;;  %v5233_v30 = vld [vmem:[#allocation37_spill] sm:$0xff]  ;;  %v5239_v4 = vld [vmem:[#allocation43_spill] sm:$0xff] }
  0x89   : > { %v1220_v50 = vsel %vm718_vm0, %v1219_v47, %v5218_v59  ;;  %1140 = vst.msk [vmem:[#allocation3 + $0x78] sm:$0xff] %vm754_vm7, %v1116_v55  ;;  %v1214_v58 = vsel %vm730_vm4, %v1213_v19, %v1212_v41  ;;  %v1227_v0 = vrot.slane %v5220_v60, 3  ;;  %v1229_v31 = vrot.slane %v5221_v5, 2  ;;  %v5241_v41 = vld [vmem:[#allocation45_spill] sm:$0xff]  ;;  %v5244_v60 = vld [vmem:[#allocation47_spill] sm:$0xff]  ;;  %v5245_v5 = vld [vmem:[#allocation48_spill] sm:$0xff] }
  0x8a   : > { %v1222_v27 = vsel %vm721_vm1, %v1221_v12, %v1220_v50  ;;  %v1216_v42 = vsel %vm733_vm5, %v1215_v44, %v1214_v58  ;;  %v1231_v45 = vrot.slane %v5222_v40, 1  ;;  %v1233_v2 = vrot.slane %v5223_v29, 7  ;;  %v5236_v44 = vld [vmem:[#allocation34_spill] sm:$0xff]  ;;  %v5240_v12 = vld [vmem:[#allocation44_spill] sm:$0xff]  ;;  %v5246_v40 = vld [vmem:[#allocation49_spill] sm:$0xff] }
  0x8b   : > { %v1224_v61 = vsel %vm724_vm2, %v1223_v51, %v1222_v27  ;;  %v1218_v3 = vsel %vm736_vm6, %v1217_v46, %v1216_v42  ;;  %v1235_v15 = vrot.slane %v5224_v39, 6  ;;  %v1237_v7 = vrot.slane %v5225_v8, 5  ;;  %v5238_v46 = vld [vmem:[#allocation41_spill] sm:$0xff]  ;;  %v5242_v50 = vld [vmem:[#allocation46_spill] sm:$0xff]  ;;  %v5247_v29 = vld [vmem:[#allocation51_spill] sm:$0xff] }
  0x8c   : > { %v1226_v57 = vsel %vm727_vm3, %v1225_v37, %v1224_v61  ;;  %1445 = vst.msk [vmem:[#allocation4] sm:$0xff] %vm754_vm7, %v1218_v3  ;;  %v1234_v20 = vsel %vm718_vm0, %v1233_v2, %v5226_v21  ;;  %v1239_v33 = vrot.slane %v5227_v17, 4  ;;  %v1241_v16 = vrot.slane %v5228_v56, 3  ;;  %v5243_v58 = vld [vmem:[#allocation42_spill] sm:$0xff]  ;;  %v5248_v39 = vld [vmem:[#allocation52_spill] sm:$0xff]  ;;  %v5249_v8 = vld [vmem:[#allocation53_spill] sm:$0xff] }
  0x8d   : > { %v1228_v9 = vsel %vm730_vm4, %v1227_v0, %v1226_v57  ;;  %v1236_v34 = vsel %vm721_vm1, %v1235_v15, %v1234_v20  ;;  %v1243_v14 = vrot.slane %v5229_v6, 2  ;;  %v1245_v1 = vrot.slane %v5230_v24, 1  ;;  %v5250_v20 = vld [vmem:[#allocation50_spill] sm:$0xff] }
  0x8e   : > { %v1230_v11 = vsel %vm733_vm5, %v1229_v31, %v1228_v9  ;;  %v1238_v10 = vsel %vm724_vm2, %v1237_v7, %v1236_v34  ;;  %v1247_v13 = vrot.slane %v5231_v62, 7  ;;  %v1249_v28 = vrot.slane %v5232_v38, 6 }
  0x8f   : > { %v1232_v18 = vsel %vm736_vm6, %v1231_v45, %v1230_v11  ;;  %v1240_v25 = vsel %vm727_vm3, %v1239_v33, %v1238_v10  ;;  %v1251_v52 = vrot.slane %v5233_v30, 5  ;;  %v1253_v48 = vrot.slane %v5234_v43, 4  ;;  %v5253_v10 = vld [vmem:[#allocation56_spill] sm:$0xff] }
  0x90   : > { %1446 = vst.msk [vmem:[#allocation4 + $0x8] sm:$0xff] %vm754_vm7, %v1232_v18  ;;  %v1255_v19 = vrot.slane %v5235_v49, 3  ;;  %v1242_v23 = vsel %vm730_vm4, %v1241_v16, %v1240_v25  ;;  %v1248_v53 = vsel %vm718_vm0, %v1247_v13, %v5236_v44  ;;  %v1257_v36 = vrot.slane %v5237_v22, 2  ;;  %v5251_v16 = vld [vmem:[#allocation54_spill] sm:$0xff] }
  0x91   : > { %v1259_v26 = vrot.slane %v5238_v46, 1  ;;  %v1244_v47 = vsel %vm733_vm5, %v1243_v14, %v1242_v23  ;;  %v1250_v54 = vsel %vm721_vm1, %v1249_v28, %v1248_v53  ;;  %v1261_v63 = vrot.slane %v5239_v4, 7 }
  0x92   : > { %v1263_v32 = vrot.slane %v5240_v12, 6  ;;  %v1246_v51 = vsel %vm736_vm6, %v1245_v1, %v1244_v47  ;;  %v1252_v55 = vsel %vm724_vm2, %v1251_v52, %v1250_v54  ;;  %v1265_v59 = vrot.slane %v5241_v41, 5  ;;  %v5252_v1 = vld [vmem:[#allocation55_spill] sm:$0xff]  ;;  %v5254_v52 = vld [vmem:[#allocation57_spill] sm:$0xff] }
  0x93   : > { %v1267_v35 = vrot.slane %v5242_v50, 4  ;;  %1447 = vst.msk [vmem:[#allocation4 + $0x10] sm:$0xff] %vm754_vm7, %v1246_v51  ;;  %v1254_v37 = vsel %vm727_vm3, %v1253_v48, %v1252_v55  ;;  %v1262_v27 = vsel %vm718_vm0, %v1261_v63, %v5243_v58  ;;  %v1269_v0 = vrot.slane %v5244_v60, 3  ;;  %v5257_v54 = vld [vmem:[#allocation65_spill] sm:$0xff]  ;;  %v5258_v51 = vld [vmem:[#allocation62_spill] sm:$0xff] }
  0x94   : > { %v1271_v31 = vrot.slane %v5245_v5, 2  ;;  %v1256_v42 = vsel %vm730_vm4, %v1255_v19, %v1254_v37  ;;  %v1264_v61 = vsel %vm721_vm1, %v1263_v32, %v1262_v27  ;;  %v1273_v45 = vrot.slane %v5246_v40, 1  ;;  %v5255_v19 = vld [vmem:[#allocation63_spill] sm:$0xff] }
  0x95   : > { %v1275_v2 = vrot.slane %v5247_v29, 7  ;;  %v1258_v3 = vsel %vm733_vm5, %v1257_v36, %v1256_v42  ;;  %v1266_v57 = vsel %vm724_vm2, %v1265_v59, %v1264_v61  ;;  %v1277_v15 = vrot.slane %v5248_v39, 6  ;;  %v5259_v59 = vld [vmem:[#allocation66_spill] sm:$0xff]  ;;  %v5260_v37 = vld [vmem:[#allocation67_spill] sm:$0xff]  ;;  %v5261_v42 = vld [vmem:[#allocation68_spill] sm:$0xff] }
  0x96   : > { %v1279_v7 = vrot.slane %v5249_v8, 5  ;;  %v1260_v9 = vsel %vm736_vm6, %v1259_v26, %v1258_v3  ;;  %v1268_v21 = vsel %vm727_vm3, %v1267_v35, %v1266_v57  ;;  %v1281_v11 = vrot.slane %v5251_v16, 4  ;;  %v5256_v26 = vld [vmem:[#allocation64_spill] sm:$0xff] }
  0x97   : > { %v1276_v33 = vsel %vm718_vm0, %v1275_v2, %v5250_v20  ;;  %1448 = vst.msk [vmem:[#allocation4 + $0x18] sm:$0xff] %vm754_vm7, %v1260_v9  ;;  %v1270_v34 = vsel %vm730_vm4, %v1269_v0, %v1268_v21  ;;  %v1283_v18 = vrot.slane %v5252_v1, 3  ;;  %v1285_v13 = vrot.slane %v5253_v10, 2  ;;  %v5264_v9 = vld [vmem:[#allocation79_spill] sm:$0xff] }
  0x98   : > { %v1278_v14 = vsel %vm721_vm1, %v1277_v15, %v1276_v33  ;;  %v1272_v28 = vsel %vm733_vm5, %v1271_v31, %v1270_v34  ;;  %v1287_v48 = vrot.slane %v5254_v52, 1  ;;  %v1289_v23 = vrot.slane %v5255_v19, 7  ;;  %v5263_v15 = vld [vmem:[#allocation78_spill] sm:$0xff] }
  0x99   : > { %v1280_v25 = vsel %vm724_vm2, %v1279_v7, %v1278_v14  ;;  %v1274_v53 = vsel %vm736_vm6, %v1273_v45, %v1272_v28  ;;  %v1291_v47 = vrot.slane %v5256_v26, 6  ;;  %v1293_v63 = vrot.slane %v5257_v54, 5  ;;  %v5262_v45 = vld [vmem:[#allocation69_spill] sm:$0xff] }
  0x9a   : > { %v1282_v36 = vsel %vm727_vm3, %v1281_v11, %v1280_v25  ;;  %1449 = vst.msk [vmem:[#allocation4 + $0x20] sm:$0xff] %vm754_vm7, %v1274_v53  ;;  %v1290_v55 = vsel %vm718_vm0, %v1289_v23, %v5258_v51  ;;  %v1295_v35 = vrot.slane %v5259_v59, 4  ;;  %v1297_v27 = vrot.slane %v5260_v37, 3  ;;  %v5265_v11 = vld [vmem:[#allocation80_spill] sm:$0xff]  ;;  %v5266_v14 = vld [vmem:[#allocation81_spill] sm:$0xff]  ;;  %v5269_v53 = vld [vmem:[#allocation83_spill] sm:$0xff] }
  0x9b   : > { %v1284_v32 = vsel %vm730_vm4, %v1283_v18, %v1282_v36  ;;  %v1292_v31 = vsel %vm721_vm1, %v1291_v47, %v1290_v55  ;;  %v1299_v61 = vrot.slane %v5261_v42, 2  ;;  %v1301_v2 = vrot.slane %v5262_v45, 1  ;;  %v5268_v23 = vld [vmem:[#allocation77_spill] sm:$0xff]  ;;  %v5270_v47 = vld [vmem:[#allocation84_spill] sm:$0xff] }
  0x9c   : > { %v1286_v0 = vsel %vm733_vm5, %v1285_v13, %v1284_v32  ;;  %v1294_v57 = vsel %vm724_vm2, %v1293_v63, %v1292_v31  ;;  %v1303_v7 = vrot.slane %v5263_v15, 7  ;;  %v1305_v21 = vrot.slane %v5264_v9, 6  ;;  %v5267_v13 = vld [vmem:[#allocation82_spill] sm:$0xff] }
  0x9d   : > { %v1288_v3 = vsel %vm736_vm6, %v1287_v48, %v1286_v0  ;;  %v1296_v33 = vsel %vm727_vm3, %v1295_v35, %v1294_v57  ;;  %v1307_v34 = vrot.slane %v5265_v11, 5  ;;  %v1309_v18 = vrot.slane %v5266_v14, 4  ;;  %v3234_v35 = vld [vmem:[%s4982_s2] sm:$0x3] }
  0x9e   : > { %1450 = vst.msk [vmem:[#allocation4 + $0x28] sm:$0xff] %vm754_vm7, %v1288_v3  ;;  %v1311_v28 = vrot.slane %v5267_v13, 3  ;;  %v1298_v25 = vsel %vm730_vm4, %v1297_v27, %v1296_v33  ;;  %v1304_v48 = vsel %vm718_vm0, %v1303_v7, %v5268_v23  ;;  %v1313_v36 = vrot.slane %v5269_v53, 2  ;;  %v3235_v27 = vld [vmem:[%s4982_s2 + $0x4] sm:$0x3] }
  0x9f   : > { %v1315_v63 = vrot.slane %v5270_v47, 1  ;;  %v1300_v32 = vsel %vm733_vm5, %v1299_v61, %v1298_v25  ;;  %v1306_v55 = vsel %vm721_vm1, %v1305_v21, %v1304_v48  ;;  %v1325_v0 = vrot.slane %v3234_v35, 1  ;;  %v3236_v61 = vld [vmem:[%s4982_s2 + $0x6] sm:$0x3]  ;;  %v3237_v21 = vld [vmem:[%s4982_s2 + $0x8] sm:$0x3] }
  0xa0   : > { %v1327_v31 = vrot.slane %v3235_v27, 7  ;;  %v1302_v3 = vsel %vm736_vm6, %v1301_v2, %v1300_v32  ;;  %v1308_v57 = vsel %vm724_vm2, %v1307_v34, %v1306_v55  ;;  %v1329_v7 = vrot.slane %v3236_v61, 6  ;;  %v3238_v2 = vld [vmem:[%s4982_s2 + $0x2] sm:$0x3]  ;;  %v3239_v48 = vld [vmem:[%s4982_s2 + $0xa] sm:$0x3] }
  0xa1   : > { %v1331_v33 = vrot.slane %v3237_v21, 5  ;;  %1451 = vst.msk [vmem:[#allocation4 + $0x30] sm:$0xff] %vm754_vm7, %v1302_v3  ;;  %v1310_v25 = vsel %vm727_vm3, %v1309_v18, %v1308_v57  ;;  %v1326_v34 = vsel %vm718_vm0, %v3238_v2, %v1325_v0  ;;  %v1333_v32 = vrot.slane %v3239_v48, 4  ;;  %v3240_v55 = vld [vmem:[%s4982_s2 + $0xc] sm:$0x3] }
  0xa2   : > { %v1335_v35 = vrot.slane %v3240_v55, 3  ;;  %v1312_v27 = vsel %vm730_vm4, %v1311_v28, %v1310_v25  ;;  %v1328_v18 = vsel %vm721_vm1, %v1327_v31, %v1326_v34  ;;  %v3241_v3 = vld [vmem:[%s4982_s2 + $0xe] sm:$0x3]  ;;  %v3242_v0 = vld [vmem:[%s4982_s2 + $0x10] sm:$0x3] }
  0xa3   : > { %v1337_v57 = vrot.slane %v3241_v3, 2  ;;  %v1339_v61 = vrot.slane %v3242_v0, 1  ;;  %v1314_v21 = vsel %vm733_vm5, %v1313_v36, %v1312_v27  ;;  %v1330_v2 = vsel %vm724_vm2, %v1329_v7, %v1328_v18  ;;  %v3243_v28 = vld [vmem:[%s4982_s2 + $0x14] sm:$0x3]  ;;  %v3244_v31 = vld [vmem:[%s4982_s2 + $0x16] sm:$0x3] }
  0xa4   : > { %v1341_v25 = vrot.slane %v3243_v28, 7  ;;  %v1343_v34 = vrot.slane %v3244_v31, 6  ;;  %v1316_v48 = vsel %vm736_vm6, %v1315_v63, %v1314_v21  ;;  %v1332_v55 = vsel %vm727_vm3, %v1331_v33, %v1330_v2  ;;  %v3245_v36 = vld [vmem:[%s4982_s2 + $0x12] sm:$0x3]  ;;  %v3246_v27 = vld [vmem:[%s4982_s2 + $0x18] sm:$0x3] }
  0xa5   : > { %v1340_v7 = vsel %vm718_vm0, %v3245_v36, %v1339_v61  ;;  %v1345_v18 = vrot.slane %v3246_v27, 5  ;;  %1452 = vst.msk [vmem:[#allocation4 + $0x38] sm:$0xff] %vm754_vm7, %v1316_v48  ;;  %v1334_v3 = vsel %vm730_vm4, %v1333_v32, %v1332_v55  ;;  %v3247_v63 = vld [vmem:[%s4982_s2 + $0x1a] sm:$0x3]  ;;  %v3248_v61 = vld [vmem:[%s4982_s2 + $0x1c] sm:$0x3] }
  0xa6   : > { %v1342_v0 = vsel %vm721_vm1, %v1341_v25, %v1340_v7  ;;  %v1347_v33 = vrot.slane %v3247_v63, 4  ;;  %v1349_v21 = vrot.slane %v3248_v61, 3  ;;  %v1336_v2 = vsel %vm733_vm5, %v1335_v35, %v1334_v3  ;;  %v3249_v32 = vld [vmem:[%s4982_s2 + $0x1e] sm:$0x3]  ;;  %v3250_v25 = vld [vmem:[%s4982_s2 + $0x20] sm:$0x3] }
  0xa7   : > { %v1344_v28 = vsel %vm724_vm2, %v1343_v34, %v1342_v0  ;;  %v1351_v31 = vrot.slane %v3249_v32, 2  ;;  %v1353_v48 = vrot.slane %v3250_v25, 1  ;;  %v1338_v55 = vsel %vm736_vm6, %v1337_v57, %v1336_v2  ;;  %v3251_v35 = vld [vmem:[%s4982_s2 + $0x24] sm:$0x3]  ;;  %v3252_v34 = vld [vmem:[%s4982_s2 + $0x26] sm:$0x3] }
  0xa8   : > { %v1346_v36 = vsel %vm727_vm3, %v1345_v18, %v1344_v28  ;;  %v1355_v7 = vrot.slane %v3251_v35, 7  ;;  %v1357_v27 = vrot.slane %v3252_v34, 6  ;;  %1453 = vst.msk [vmem:[#allocation4 + $0x40] sm:$0xff] %vm754_vm7, %v1338_v55  ;;  %v3253_v57 = vld [vmem:[%s4982_s2 + $0x22] sm:$0x3]  ;;  %v1359_v0 = vrot.slane %v5227_v17, 5 }
  0xa9   : > { %v1348_v3 = vsel %vm730_vm4, %v1347_v33, %v1346_v36  ;;  %v1354_v18 = vsel %vm718_vm0, %v3253_v57, %v1353_v48  ;;  %v1361_v63 = vrot.slane %v5228_v56, 4  ;;  %v1363_v28 = vrot.slane %v5229_v6, 3 }
  0xaa   : > { %v1350_v61 = vsel %vm733_vm5, %v1349_v21, %v1348_v3  ;;  %v1356_v2 = vsel %vm721_vm1, %v1355_v7, %v1354_v18  ;;  %v1365_v32 = vrot.slane %v5230_v24, 2  ;;  %v1367_v55 = vrot.slane %v5236_v44, 1 }
  0xab   : > { %v1352_v33 = vsel %vm736_vm6, %v1351_v31, %v1350_v61  ;;  %v1358_v25 = vsel %vm724_vm2, %v1357_v27, %v1356_v2  ;;  %v1369_v48 = vrot.slane %v5232_v38, 7  ;;  %v1371_v56 = vrot.slane %v5233_v30, 6 }
  0xac   : > { %1454 = vst.msk [vmem:[#allocation4 + $0x48] sm:$0xff] %vm754_vm7, %v1352_v33  ;;  %v1360_v17 = vsel %vm727_vm3, %v1359_v0, %v1358_v25  ;;  %v1373_v21 = vrot.slane %v5234_v43, 5  ;;  %v1375_v6 = vrot.slane %v5235_v49, 4  ;;  %v1368_v31 = vsel %vm718_vm0, %v5231_v62, %v1367_v55 }
  0xad   : > { %v1362_v24 = vsel %vm730_vm4, %v1361_v63, %v1360_v17  ;;  %v1377_v36 = vrot.slane %v5237_v22, 3  ;;  %v1379_v44 = vrot.slane %v5238_v46, 2  ;;  %v1370_v35 = vsel %vm721_vm1, %v1369_v48, %v1368_v31 }
  0xae   : > { %v1364_v38 = vsel %vm733_vm5, %v1363_v28, %v1362_v24  ;;  %v1381_v7 = vrot.slane %v5243_v58, 1  ;;  %v1383_v30 = vrot.slane %v5240_v12, 7  ;;  %v1372_v49 = vsel %vm724_vm2, %v1371_v56, %v1370_v35 }
  0xaf   : > { %v1366_v43 = vsel %vm736_vm6, %v1365_v32, %v1364_v38  ;;  %v1385_v34 = vrot.slane %v5241_v41, 6  ;;  %v1387_v62 = vrot.slane %v5242_v50, 5  ;;  %v1374_v22 = vsel %vm727_vm3, %v1373_v21, %v1372_v49 }
  0xb0   : > { %1455 = vst.msk [vmem:[#allocation4 + $0x50] sm:$0xff] %vm754_vm7, %v1366_v43  ;;  %v1382_v46 = vsel %vm718_vm0, %v5239_v4, %v1381_v7  ;;  %v1389_v27 = vrot.slane %v5244_v60, 4  ;;  %v1391_v58 = vrot.slane %v5245_v5, 3  ;;  %v1376_v12 = vsel %vm730_vm4, %v1375_v6, %v1374_v22 }
  0xb1   : > { %v1384_v3 = vsel %vm721_vm1, %v1383_v30, %v1382_v46  ;;  %v1393_v57 = vrot.slane %v5246_v40, 2  ;;  %v1395_v41 = vrot.slane %v5250_v20, 1  ;;  %v1378_v50 = vsel %vm733_vm5, %v1377_v36, %v1376_v12 }
  0xb2   : > { %v1386_v18 = vsel %vm724_vm2, %v1385_v34, %v1384_v3  ;;  %v1397_v0 = vrot.slane %v5248_v39, 7  ;;  %v1399_v4 = vrot.slane %v5249_v8, 6  ;;  %v1380_v60 = vsel %vm736_vm6, %v1379_v44, %v1378_v50 }
  0xb3   : > { %v1388_v5 = vsel %vm727_vm3, %v1387_v62, %v1386_v18  ;;  %v1396_v63 = vsel %vm718_vm0, %v5247_v29, %v1395_v41  ;;  %v1401_v61 = vrot.slane %v5251_v16, 5  ;;  %1456 = vst.msk [vmem:[#allocation4 + $0x58] sm:$0xff] %vm754_vm7, %v1380_v60  ;;  %v1403_v2 = vrot.slane %v5252_v1, 4 }
  0xb4   : > { %v1390_v40 = vsel %vm730_vm4, %v1389_v27, %v1388_v5  ;;  %v1398_v20 = vsel %vm721_vm1, %v1397_v0, %v1396_v63  ;;  %v1405_v39 = vrot.slane %v5253_v10, 3  ;;  %v1407_v32 = vrot.slane %v5254_v52, 2 }
  0xb5   : > { %v1392_v8 = vsel %vm733_vm5, %v1391_v58, %v1390_v40  ;;  %v1400_v28 = vsel %vm724_vm2, %v1399_v4, %v1398_v20  ;;  %v1409_v29 = vrot.slane %v5258_v51, 1  ;;  %v1411_v25 = vrot.slane %v5256_v26, 7 }
  0xb6   : > { %v1394_v16 = vsel %vm736_vm6, %v1393_v57, %v1392_v8  ;;  %v1402_v33 = vsel %vm727_vm3, %v1401_v61, %v1400_v28  ;;  %v1413_v55 = vrot.slane %v5257_v54, 6  ;;  %v1415_v48 = vrot.slane %v5259_v59, 5 }
  0xb7   : > { %1457 = vst.msk [vmem:[#allocation4 + $0x60] sm:$0xff] %vm754_vm7, %v1394_v16  ;;  %v1404_v1 = vsel %vm730_vm4, %v1403_v2, %v1402_v33  ;;  %v1410_v10 = vsel %vm718_vm0, %v5255_v19, %v1409_v29  ;;  %v1417_v52 = vrot.slane %v5260_v37, 4  ;;  %v1419_v56 = vrot.slane %v5261_v42, 3 }
  0xb8   : > { %v1406_v51 = vsel %vm733_vm5, %v1405_v39, %v1404_v1  ;;  %v1412_v17 = vsel %vm721_vm1, %v1411_v25, %v1410_v10  ;;  %v1421_v26 = vrot.slane %v5262_v45, 2  ;;  %v1423_v6 = vrot.slane %v5268_v23, 1 }
  0xb9   : > { %v1408_v54 = vsel %vm736_vm6, %v1407_v32, %v1406_v51  ;;  %v1414_v21 = vsel %vm724_vm2, %v1413_v55, %v1412_v17  ;;  %v1425_v19 = vrot.slane %v5264_v9, 7  ;;  %v1427_v37 = vrot.slane %v5265_v11, 6 }
  0xba   : > { %1458 = vst.msk [vmem:[#allocation4 + $0x68] sm:$0xff] %vm754_vm7, %v1408_v54  ;;  %v1416_v59 = vsel %vm727_vm3, %v1415_v48, %v1414_v21  ;;  %v1429_v24 = vrot.slane %v5266_v14, 5  ;;  %v1424_v45 = vsel %vm718_vm0, %v5263_v15, %v1423_v6  ;;  %v1431_v31 = vrot.slane %v5267_v13, 4 }
  0xbb   : > { %v1418_v42 = vsel %vm730_vm4, %v1417_v52, %v1416_v59  ;;  %v1426_v23 = vsel %vm721_vm1, %v1425_v19, %v1424_v45  ;;  %v1433_v9 = vrot.slane %v5269_v53, 3  ;;  %v1435_v11 = vrot.slane %v5270_v47, 2 }
  0xbc   : > { %v1420_v36 = vsel %vm733_vm5, %v1419_v56, %v1418_v42  ;;  %v1428_v38 = vsel %vm724_vm2, %v1427_v37, %v1426_v23  ;;  %v3304_v14 = vmov 0.0  }
  0xbd   : > { %v1422_v44 = vsel %vm736_vm6, %v1421_v26, %v1420_v36  ;;  %1461 = vst.msk [vmem:[#allocation5] sm:$0xff] %vm754_vm7, %v3304_v14  ;;  %1462 = vst.msk [vmem:[#allocation5 + $0x8] sm:$0xff] %vm754_vm7, %v3304_v14  ;;  %v1430_v15 = vsel %vm727_vm3, %v1429_v24, %v1428_v38 }
  0xbe   : > { %1459 = vst.msk [vmem:[#allocation4 + $0x70] sm:$0xff] %vm754_vm7, %v1422_v44  ;;  %v1432_v13 = vsel %vm730_vm4, %v1431_v31, %v1430_v15 }
  0xbf   : > { %v1434_v35 = vsel %vm733_vm5, %v1433_v9, %v1432_v13 }
  0xc0   : > { %v1436_v53 = vsel %vm736_vm6, %v1435_v11, %v1434_v35 }
  0xc1   : > { %1460 = vst.msk [vmem:[#allocation4 + $0x78] sm:$0xff] %vm754_vm7, %v1436_v53 }
  0xc2 PF: > { %v1574_v47 = vld [vmem:[%s3414_s25] sm:$0xff]  ;;  %v1575_v7 = vld [vmem:[%s3414_s25 + $0x8] sm:$0xff]  ;;  %v1576_v30 = vld [vmem:[%s3414_s25 + $0x10] sm:$0xff]  ;;  %vm1476_vm8 = vcmask 261120   ;;  %v3305_v29 = vmov 0.0|0.0   ;;  %vm3306_vm9 = vmmov 0   ;;  %s5273_s16 = scalar_lea.vmem %s4985_s5, %s3399_s15  ;;  %s5274_s18 = scalar_lea.vmem %s4989_s9, %s3399_s15 }
  0xc3   : > { %v3140_v43 = vpack.c.bf16 %v1575_v7, %v1574_v47  ;;  %v1577_v49 = vld [vmem:[%s3414_s25 + $0x18] sm:$0xff]  ;;  %v1558_v34 = vld [vmem:[#allocation3] sm:$0xff]  ;;  %v1465_v22 = vld [vmem:[%s3409_s22] sm:$0xff]  ;;  %v3307_v19 = vmov 0.0   ;;  %vm1998_vm10 = vcmask 64512   ;;  %vm2193_vm12 = vcmask 523264  }
  0xc4   : > { %v3144_v62 = vpack.c.bf16 %v1577_v49, %v1576_v30  ;;  %2995 = vmatprep.mubr.msk.f32.mxu1 %vm1476_vm8, %v1558_v34  ;;  %v1466_v46 = vld [vmem:[%s3409_s22 + $0x8] sm:$0xff]  ;;  %v1467_v58 = vld [vmem:[%s3409_s22 + $0x10] sm:$0xff]  ;;  %v1468_v12 = vld [vmem:[%s3409_s22 + $0x18] sm:$0xff]  ;;  %p2880_p5 = scmp.ne.s32.totalorder %s3393_s30, 3 }
  0xc5   : > { %3141 = vmatprep.subr.bf16.mxu1 %v3140_v43  ;;  %v3132_v27 = vpack.c.bf16 %v1466_v46, %v1465_v22  ;;  %v3136_v3 = vpack.c.bf16 %v1468_v12, %v1467_v58  ;;  %v1463_v57 = vld [vmem:[#allocation2] sm:$0xff]  ;;  %v1559_v41 = vld [vmem:[#allocation3 + $0x8] sm:$0xff]  ;;  %v1561_v18 = vld [vmem:[#allocation3 + $0x18] sm:$0xff]  ;;  %vm2471_vm13 = vcmask (!%p2880_p5), 1041409   ;;  %vm2474_vm14 = vcmask (!%p2880_p5), 1042434   ;;  %s5275_s20 = sld [smem:[#allocation86_spill]] (!%p2880_p5) }
  0xc6   : > { %3143 = vmatpush3.bf16.msra.mxu1 %v3140_v43  ;;  %v1560_v50 = vld [vmem:[#allocation3 + $0x10] sm:$0xff]  ;;  %2984 = vmatprep.mubr.msk.f32.mxu0 %vm1476_vm8, %v1463_v57  ;;  %v1562_v0 = vld [vmem:[#allocation3 + $0x20] sm:$0xff]  ;;  %v1464_v4 = vld [vmem:[#allocation2 + $0x8] sm:$0xff]  ;;  %vm2477_vm15 = vcmask (!%p2880_p5), 1043459   ;;  %vm2480_vm0 = vcmask (!%p2880_p5), 1044484   ;;  %vm2483_vm1 = vcmask (!%p2880_p5), 1045509  }
  0xc7   : > { %3145 = vmatprep.subr.bf16.mxu1 %v3144_v62  ;;  %3133 = vmatprep.subr.bf16.mxu0 %v3132_v27  ;;  %v1563_v60 = vld [vmem:[#allocation3 + $0x28] sm:$0xff]  ;;  %v1564_v5 = vld [vmem:[#allocation3 + $0x30] sm:$0xff]  ;;  %v1565_v63 = vld [vmem:[#allocation3 + $0x38] sm:$0xff]  ;;  %vm2486_vm2 = vcmask (!%p2880_p5), 1046534   ;;  %vm2489_vm3 = vcmask (!%p2880_p5), 1047559   ;;  %vm2623_vm4 = vcmask (!%p2880_p5), 253952  }
  0xc8   : > { %3135 = vmatpush3.bf16.msra.mxu0 %v3132_v27  ;;  %v1566_v61 = vld [vmem:[#allocation3 + $0x40] sm:$0xff]  ;;  %v1567_v40 = vld [vmem:[#allocation3 + $0x48] sm:$0xff]  ;;  %v1568_v20 = vld [vmem:[#allocation3 + $0x50] sm:$0xff] }
  0xc9   : > { %3137 = vmatprep.subr.bf16.mxu0 %v3136_v3  ;;  %v1569_v2 = vld [vmem:[#allocation3 + $0x58] sm:$0xff]  ;;  %v1570_v39 = vld [vmem:[#allocation3 + $0x60] sm:$0xff]  ;;  %v1571_v8 = vld [vmem:[#allocation3 + $0x68] sm:$0xff] }
  0xca   : > { %3147 = vmatpush3.bf16.msra.mxu1 %v3144_v62  ;;  %v1572_v28 = vld [vmem:[#allocation3 + $0x70] sm:$0xff]  ;;  %v1573_v32 = vld [vmem:[#allocation3 + $0x78] sm:$0xff]  ;;  %v1796_v55 = vld [vmem:[%s3423_s13 + $0x10] sm:$0xff] }
  0xcb   : > { %3156 = vmatprep.subr.bf16.mxu1 %v3305_v29  ;;  %v1794_v16 = vld [vmem:[%s3423_s13] sm:$0xff]  ;;  %v1795_v33 = vld [vmem:[%s3423_s13 + $0x8] sm:$0xff]  ;;  %v1797_v1 = vld [vmem:[%s3423_s13 + $0x18] sm:$0xff] }
  0xcc   : > { %3139 = vmatpush3.bf16.msra.mxu0 %v3136_v3  ;;  %v3148_v25 = vpack.c.bf16 %v1795_v33, %v1794_v16  ;;  %v3152_v10 = vpack.c.bf16 %v1797_v1, %v1796_v55  ;;  %v1778_v48 = vld [vmem:[#allocation4] sm:$0xff]  ;;  %v1779_v52 = vld [vmem:[#allocation4 + $0x8] sm:$0xff]  ;;  %v1780_v51 = vld [vmem:[#allocation4 + $0x10] sm:$0xff] }
  0xcd   : > { %2996 = vmatmul.mubr.msk.f32.vlgmr.msra.gmra.mrb[0].mxu1 %vm1476_vm8, %v1559_v41  ;;  %v1781_v17 = vld [vmem:[#allocation4 + $0x18] sm:$0xff]  ;;  %v1782_v56 = vld [vmem:[#allocation4 + $0x20] sm:$0xff]  ;;  %v1783_v26 = vld [vmem:[#allocation4 + $0x28] sm:$0xff] }
  0xce   : > { %2998 = vmatprep.mubr.msk.f32.mxu1 %vm1476_vm8, %v1560_v50  ;;  %3149 = vmatprep.subr.bf16.mxu0 %v3148_v25  ;;  %v1784_v54 = vld [vmem:[#allocation4 + $0x30] sm:$0xff]  ;;  %v1785_v21 = vld [vmem:[#allocation4 + $0x38] sm:$0xff]  ;;  %v1786_v6 = vld [vmem:[#allocation4 + $0x40] sm:$0xff] }
  0xcf   : > { %2985 = vmatmul.mubr.msk.f32.vlgmr.msra.gmra.mrb[0].mxu0 %vm1476_vm8, %v1464_v4  ;;  %v1787_v59 = vld [vmem:[#allocation4 + $0x48] sm:$0xff]  ;;  %v1788_v37 = vld [vmem:[#allocation4 + $0x50] sm:$0xff]  ;;  %v1789_v24 = vld [vmem:[#allocation4 + $0x58] sm:$0xff] }
  0xd0   : > { %3151 = vmatpush3.bf16.msra.mxu0 %v3148_v25  ;;  %3027 = vmatprep.mubr.msk.f32.mxu0 %vm1476_vm8, %v1778_v48  ;;  %v1790_v42 = vld [vmem:[#allocation4 + $0x60] sm:$0xff]  ;;  %v1791_v45 = vld [vmem:[#allocation4 + $0x68] sm:$0xff]  ;;  %v1792_v31 = vld [vmem:[#allocation4 + $0x70] sm:$0xff] }
  0xd1   : > { %2999 = vmatmul.mubr.msk.f32.gmra.mrb[2].mxu1 %vm1476_vm8, %v1561_v18  ;;  %3153 = vmatprep.subr.bf16.mxu0 %v3152_v10  ;;  %v1793_v36 = vld [vmem:[#allocation4 + $0x78] sm:$0xff]  ;;  %v2824_v23 = vld [vmem:[%s540_s28] ss:$0 sm:$0xff]  ;;  %vm4825_vm11 = vmpackc.low %vm1998_vm10, %vm1998_vm10 }
  0xd2   : > { %3001 = vmatprep.mubr.msk.f32.mxu1 %vm1476_vm8, %v1562_v0  ;;  %v2821_v25 = vld [vmem:[%s5273_s16] ss:$0 sm:$0xff] }
  0xd4   : > { %3155 = vmatpush3.bf16.msra.mxu0 %v3152_v10 }
  0xd5   : > { %3002 = vmatmul.mubr.msk.f32.gmra.mrb[4].mxu1 %vm1476_vm8, %v1563_v60  ;;  %3172 = vmatprep.subr.bf16.mxu0 %v3305_v29 }
  0xd6   : > { %3004 = vmatprep.mubr.msk.f32.mxu1 %vm1476_vm8, %v1564_v5 }
  0xd7   : > { %3028 = vmatmul.mubr.msk.f32.vlgmr.msra.gmra.mrb[2].mxu0 %vm1476_vm8, %v1779_v52  ;;  %v2841_v52 = vld [vmem:[%s5274_s18] ss:$0 sm:$0xff] }
  0xd8   : > { %3030 = vmatprep.mubr.msk.f32.mxu0 %vm1476_vm8, %v1780_v51 }
  0xd9   : > { %3005 = vmatmul.mubr.msk.f32.gmra.mrb[6].mxu1 %vm1476_vm8, %v1565_v63 }
  0xda   : > { %3007 = vmatprep.mubr.msk.f32.mxu1 %vm1476_vm8, %v1566_v61 }
  0xdb   : > { %3031 = vmatmul.mubr.msk.f32.gmra.mrb[4].mxu0 %vm1476_vm8, %v1781_v17 }
  0xdc   : > { %3033 = vmatprep.mubr.msk.f32.mxu0 %vm1476_vm8, %v1782_v56 }
  0xdd   : > { %3008 = vmatmul.mubr.msk.f32.gmra.mrb[8].mxu1 %vm1476_vm8, %v1567_v40 }
  0xde   : > { %3010 = vmatprep.mubr.msk.f32.mxu1 %vm1476_vm8, %v1568_v20 }
  0xdf   : > { %3034 = vmatmul.mubr.msk.f32.gmra.mrb[6].mxu0 %vm1476_vm8, %v1783_v26 }
  0xe0   : > { %3036 = vmatprep.mubr.msk.f32.mxu0 %vm1476_vm8, %v1784_v54 }
  0xe1   : > { %3011 = vmatmul.mubr.msk.f32.gmra.mrb[10].mxu1 %vm1476_vm8, %v1569_v2 }
  0xe2   : > { %3013 = vmatprep.mubr.msk.f32.mxu1 %vm1476_vm8, %v1570_v39 }
  0xe3   : > { %3037 = vmatmul.mubr.msk.f32.gmra.mrb[8].mxu0 %vm1476_vm8, %v1785_v21 }
  0xe4   : > { %3039 = vmatprep.mubr.msk.f32.mxu0 %vm1476_vm8, %v1786_v6 }
  0xe5   : > { %3014 = vmatmul.mubr.msk.f32.gmra.mrb[12].mxu1 %vm1476_vm8, %v1571_v8 }
  0xe6   : > { %3016 = vmatprep.mubr.msk.f32.mxu1 %vm1476_vm8, %v1572_v28 }
  0xe7   : > { %3040 = vmatmul.mubr.msk.f32.gmra.mrb[10].mxu0 %vm1476_vm8, %v1787_v59 }
  0xe8   : > { %3042 = vmatprep.mubr.msk.f32.mxu0 %vm1476_vm8, %v1788_v37 }
  0xe9   : > { %3017 = vmatmul.mubr.msk.f32.gmra.mrb[14].mxu1 %vm1476_vm8, %v1573_v32 }
  0xea   : > { %3067 = vmatprep.mubr.msk.f32.mxu1 %vm3306_vm9, %v3307_v19 }
  0xeb   : > { %3043 = vmatmul.mubr.msk.f32.gmra.mrb[12].mxu0 %vm1476_vm8, %v1789_v24 }
  0xec   : > { %3045 = vmatprep.mubr.msk.f32.mxu0 %vm1476_vm8, %v1790_v42 }
  0xef   : > { %3046 = vmatmul.mubr.msk.f32.gmra.mrb[14].mxu0 %vm1476_vm8, %v1791_v45 }
  0xf0   : > { %3048 = vmatprep.mubr.msk.f32.mxu0 %vm1476_vm8, %v1792_v31 }
  0xf3   : > { %3049 = vmatmul.mubr.msk.f32.gmra.mrb[16].mxu0 %vm1476_vm8, %v1793_v36 }
  0xf4   : > { %3086 = vmatprep.mubr.msk.f32.mxu0 %vm3306_vm9, %v3307_v19 }
 0x1a0   : > { %v2997_v9 = vpop.f32.mrb[0].mxu1 }
 0x1a1   : > { %v1705_v44 = vadd.f32 %v2997_v9, %v2824_v23  ;;  %v1699_v38 = vpop.f32.mrb[1].mxu1 }
 0x1a2   : > { %v1700_v11 = vadd.f32 %v2824_v23, %v1699_v38  ;;  %v2986_v47 = vpop.f32.mrb[0].mxu0 }
 0x1a3   : > { %v1549_v30 = vpop.f32.mrb[1].mxu0  ;;  %v1555_v48 = vadd.f32 %v2986_v47, %v2821_v25 }
 0x1a4   : > { %v3157_v15 = vpack.c.bf16 %v1705_v44, %v1700_v11  ;;  %v3000_v13 = vpop.f32.mrb[2].mxu1  ;;  %v1550_v10 = vadd.f32 %v2821_v25, %v1549_v30 }
 0x1a5   : > { %v1715_v35 = vadd.f32 %v3000_v13, %v2824_v23  ;;  %v1709_v53 = vpop.f32.mrb[3].mxu1 }
 0x1a6   : > { %v1710_v7 = vadd.f32 %v2824_v23, %v1709_v53  ;;  %3159 = vmatpush3.bf16.xpose.msk.msra.mxu1 %vm4825_vm11, %v3157_v15 }
 0x1a7   : > { %3160 = vmatprep.subr.bf16.mxu1 %v3305_v29 }
 0x1a8   : > { %v3161_v43 = vpack.c.bf16 %v1715_v35, %v1710_v7  ;;  %v3003_v49 = vpop.f32.mrb[4].mxu1 }
 0x1a9   : > { %v1725_v34 = vadd.f32 %v3003_v49, %v2824_v23  ;;  %v1719_v62 = vpop.f32.mrb[5].mxu1 }
 0x1aa   : > { %v1720_v22 = vadd.f32 %v2824_v23, %v1719_v62  ;;  %v3029_v51 = vpop.f32.mrb[2].mxu0 }
 0x1ab   : > { %v1925_v17 = vadd.f32 %v3029_v51, %v2841_v52  ;;  %v1919_v56 = vpop.f32.mrb[3].mxu0 }
 0x1ac   : > { %v3165_v46 = vpack.c.bf16 %v1725_v34, %v1720_v22  ;;  %v3006_v27 = vpop.f32.mrb[6].mxu1  ;;  %v1920_v26 = vadd.f32 %v2841_v52, %v1919_v56 }
 0x1ad   : > { %v1735_v58 = vadd.f32 %v3006_v27, %v2824_v23  ;;  %v1729_v12 = vpop.f32.mrb[7].mxu1 }
 0x1ae   : > { %v1730_v3 = vadd.f32 %v2824_v23, %v1729_v12  ;;  %3163 = vmatpush3.bf16.xpose.msk.msra.mxu1 %vm4825_vm11, %v3161_v43  ;;  %v3189_v54 = vpack.c.bf16 %v1925_v17, %v1920_v26  ;;  %v3032_v21 = vpop.f32.mrb[4].mxu0  ;;  %v2363_v26 = vld [vmem:[#allocation5 + $0x8] sm:$0xff] }
 0x1af   : > { %3164 = vmatprep.subr.bf16.mxu1 %v3305_v29  ;;  %v1935_v6 = vadd.f32 %v3032_v21, %v2841_v52  ;;  %v1929_v59 = vpop.f32.mrb[5].mxu0 }
 0x1b0   : > { %v3169_v57 = vpack.c.bf16 %v1735_v58, %v1730_v3  ;;  %v3009_v41 = vpop.f32.mrb[8].mxu1  ;;  %v1930_v37 = vadd.f32 %v2841_v52, %v1929_v59 }
 0x1b1   : > { %v1745_v50 = vadd.f32 %v3009_v41, %v2824_v23  ;;  %v1739_v18 = vpop.f32.mrb[9].mxu1 }
 0x1b2   : > { %v1740_v0 = vadd.f32 %v2824_v23, %v1739_v18  ;;  %v3192_v24 = vpack.c.bf16 %v1935_v6, %v1930_v37  ;;  %v3035_v42 = vpop.f32.mrb[6].mxu0 }
 0x1b3   : > { %v1939_v45 = vpop.f32.mrb[7].mxu0 }
 0x1b4   : > { %v3173_v4 = vpack.c.bf16 %v1745_v50, %v1740_v0  ;;  %v3012_v60 = vpop.f32.mrb[10].mxu1  ;;  %v1940_v31 = vadd.f32 %v2841_v52, %v1939_v45  ;;  %v2457_v45 = vld [vmem:[%s4980_s0 + $0x6] sm:$0x3] (!%p2880_p5) }
 0x1b5   : > { %v1755_v5 = vadd.f32 %v3012_v60, %v2824_v23  ;;  %v1749_v63 = vpop.f32.mrb[11].mxu1 }
 0x1b6   : > { %3167 = vmatpush3.bf16.xpose.msk.msra.mxu1 %vm4825_vm11, %v3165_v46  ;;  %3175 = vmatpush3.bf16.xpose.msk.msra.mxu0 %vm4825_vm11, %v3173_v4  ;;  %v1750_v61 = vadd.f32 %v2824_v23, %v1749_v63 }
 0x1b7   : > { %3168 = vmatprep.subr.bf16.mxu1 %v3305_v29  ;;  %3176 = vmatprep.subr.bf16.mxu0 %v3305_v29 }
 0x1b8   : > { %v3177_v40 = vpack.c.bf16 %v1755_v5, %v1750_v61  ;;  %v3015_v20 = vpop.f32.mrb[12].mxu1 }
 0x1b9   : > { %v1765_v2 = vadd.f32 %v3015_v20, %v2824_v23  ;;  %v1759_v39 = vpop.f32.mrb[13].mxu1 }
 0x1ba   : > { %v1760_v8 = vadd.f32 %v2824_v23, %v1759_v39 }
 0x1bc   : > { %v3181_v28 = vpack.c.bf16 %v1765_v2, %v1760_v8  ;;  %v3018_v32 = vpop.f32.mrb[14].mxu1 }
 0x1bd   : > { %v1775_v16 = vadd.f32 %v3018_v32, %v2824_v23  ;;  %v1769_v33 = vpop.f32.mrb[15].mxu1 }
 0x1be   : > { %3171 = vmatpush3.bf16.xpose.msk.msra.mxu1 %vm4825_vm11, %v3169_v57  ;;  %3179 = vmatpush3.bf16.xpose.msk.msra.mxu0 %vm4825_vm11, %v3177_v40  ;;  %v1770_v55 = vadd.f32 %v2824_v23, %v1769_v33  ;;  %v3038_v23 = vpop.f32.mrb[8].mxu0 }
 0x1bf   : > { %3180 = vmatprep.subr.bf16.mxu0 %v3305_v29  ;;  %3188 = vmatprep.subr.bf16.mxu1 %v3305_v29  ;;  %v1955_v9 = vadd.f32 %v3038_v23, %v2841_v52  ;;  %v1949_v44 = vpop.f32.mrb[9].mxu0  ;;  %v2460_v23 = vld [vmem:[%s4980_s0 + $0xc] sm:$0x3] (!%p2880_p5) }
 0x1c0   : > { %v3185_v1 = vpack.c.bf16 %v1775_v16, %v1770_v55  ;;  %v1950_v38 = vadd.f32 %v2841_v52, %v1949_v44  ;;  %v3041_v14 = vpop.f32.mrb[10].mxu0  ;;  %v2364_v16 = vld [vmem:[%s3433_s23] sm:$0xff]  ;;  %v2461_v44 = vld [vmem:[%s4980_s0 + $0xe] sm:$0x3] (!%p2880_p5) }
 0x1c1   : > { %v1965_v15 = vadd.f32 %v3041_v14, %v2841_v52  ;;  %v1959_v13 = vpop.f32.mrb[11].mxu0 }
 0x1c2   : > { %v3198_v11 = vpack.c.bf16 %v1955_v9, %v1950_v38  ;;  %v1960_v35 = vadd.f32 %v2841_v52, %v1959_v13  ;;  %v3044_v47 = vpop.f32.mrb[12].mxu0 }
 0x1c3   : > { %v1975_v7 = vadd.f32 %v3044_v47, %v2841_v52  ;;  %v1969_v30 = vpop.f32.mrb[13].mxu0 }
 0x1c4   : > { %v3201_v53 = vpack.c.bf16 %v1965_v15, %v1960_v35  ;;  %v1970_v43 = vadd.f32 %v2841_v52, %v1969_v30  ;;  %v3047_v34 = vpop.f32.mrb[14].mxu0 }
 0x1c5   : > { %3068 = vmatmul.mubr.msk.f32.vlgmr.msra.gmra.mrb[16].mxu1 %vm1998_vm10, %v1550_v10  ;;  %v1985_v62 = vadd.f32 %v3047_v34, %v2841_v52  ;;  %v1979_v22 = vpop.f32.mrb[15].mxu0  ;;  %v2496_v34 = vrot.slane (!%p2880_p5), %v2457_v45, 6 }
 0x1c6   : > { %3183 = vmatpush3.bf16.xpose.msk.msra.mxu0 %vm4825_vm11, %v3181_v28  ;;  %3105 = vmatprep.mubr.msk.f32.mxu1 %vm3306_vm9, %v3307_v19  ;;  %v3204_v49 = vpack.c.bf16 %v1975_v7, %v1970_v43  ;;  %v1980_v46 = vadd.f32 %v2841_v52, %v1979_v22  ;;  %v3050_v58 = vpop.f32.mrb[16].mxu0  ;;  %v2488_v7 = vrot.slane (!%p2880_p5), %v2461_v44, 1 }
 0x1c7   : > { %3184 = vmatprep.subr.bf16.mxu0 %v3305_v29  ;;  %3190 = vmatpush3.bf16.msra.mxu1 %v3189_v54  ;;  %v1995_v12 = vadd.f32 %v3050_v58, %v2841_v52  ;;  %v1989_v3 = vpop.f32.mrb[17].mxu0  ;;  %v2362_v54 = vld [vmem:[#allocation5] sm:$0xff] }
 0x1c8   : > { %3191 = vmatprep.subr.bf16.mxu1 %v3305_v29  ;;  %v3207_v27 = vpack.c.bf16 %v1985_v62, %v1980_v46  ;;  %v1990_v57 = vadd.f32 %v2841_v52, %v1989_v3 }
 0x1ca   : > { %v3210_v41 = vpack.c.bf16 %v1995_v12, %v1990_v57  ;;  %v2502_v57 = vrot.slane (!%p2880_p5), %v2460_v23, 3 }
 0x1cb   : > { %3193 = vmatpush3.bf16.msra.mxu1 %v3192_v24  ;;  %v2454_v24 = vld [vmem:[%s4980_s0] sm:$0x3] (!%p2880_p5) }
 0x1cc   : > { %3194 = vmatprep.subr.bf16.mxu1 %v3305_v29  ;;  %v2492_v30 = vrot.slane (!%p2880_p5), %v2454_v24, 1 }
 0x1ce   : > { %3187 = vmatpush3.bf16.xpose.msk.msra.mxu0 %vm4825_vm11, %v3185_v1 }
 0x1cf   : > { %3200 = vmatprep.subr.bf16.mxu0 %v3305_v29 }
 0x1d5   : > { %3087 = vmatmul.mubr.msk.f32.vlgmr.msra.gmra.mrb[18].mxu0 %vm1998_vm10, %v1555_v48 }
 0x1d6   : > { %3124 = vmatprep.mubr.msk.f32.mxu0 %vm3306_vm9, %v3307_v19  ;;  %v1945_v19 = vadd.f32 %v3035_v42, %v2841_v52  ;;  %3202 = vmatpush3.bf16.msra.mxu0 %v3201_v53  ;;  %v2455_v42 = vld [vmem:[%s4980_s0 + $0x2] sm:$0x3] (!%p2880_p5)  ;;  %v2485_v53 = vrot.slane (!%p2880_p5), %v2460_v23, 2 }
 0x1d7   : > { %3203 = vmatprep.subr.bf16.mxu0 %v3305_v29  ;;  %v2470_v9 = vrot.slane (!%p2880_p5), %v2455_v42, 7 }
 0x1d8   : > { %v3195_v36 = vpack.c.bf16 %v1945_v19, %v1940_v31  ;;  %v2456_v19 = vld [vmem:[%s4980_s0 + $0x4] sm:$0x3] (!%p2880_p5)  ;;  %v2458_v31 = vld [vmem:[%s4980_s0 + $0x8] sm:$0x3] (!%p2880_p5) }
 0x1d9   : > { %v2473_v38 = vrot.slane (!%p2880_p5), %v2456_v19, 6  ;;  %v2472_v14 = vsel (!%p2880_p5), %vm2471_vm13, %v2470_v9, %v2454_v24  ;;  %v2479_v15 = vrot.slane (!%p2880_p5), %v2458_v31, 4  ;;  %v2498_v62 = vrot.slane (!%p2880_p5), %v2458_v31, 5 }
 0x1da   : > { %3196 = vmatpush3.bf16.msra.mxu1 %v3195_v36  ;;  %3205 = vmatpush3.bf16.msra.mxu0 %v3204_v49  ;;  %v2459_v36 = vld [vmem:[%s4980_s0 + $0xa] sm:$0x3] (!%p2880_p5)  ;;  %v2494_v49 = vrot.slane (!%p2880_p5), %v2456_v19, 7 }
 0x1db   : > { %3197 = vmatprep.subr.bf16.mxu1 %v3305_v29  ;;  %3206 = vmatprep.subr.bf16.mxu0 %v3305_v29  ;;  %v2482_v13 = vrot.slane (!%p2880_p5), %v2459_v36, 3  ;;  %v2475_v35 = vsel (!%p2880_p5), %vm2474_vm14, %v2473_v38, %v2472_v14  ;;  %v2500_v58 = vrot.slane (!%p2880_p5), %v2459_v36, 4  ;;  %v2883_v36 = vld [vmem:[%s5275_s20] ss:$0 sm:$0xff] (!%p2880_p5) }
 0x1de   : > { %3199 = vmatpush3.bf16.msra.mxu1 %v3198_v11  ;;  %3208 = vmatpush3.bf16.msra.mxu0 %v3207_v27  ;;  %v2476_v11 = vrot.slane (!%p2880_p5), %v2457_v45, 5  ;;  %v2493_v27 = vsel (!%p2880_p5), %vm2471_vm13, %v2455_v42, %v2492_v30  ;;  %v2882_v45 = vld [vmem:[%s4992_s12] ss:$0 sm:$0xff] (!%p2880_p5) }
 0x1df   : > { %3209 = vmatprep.subr.bf16.mxu0 %v3305_v29  ;;  %3127 = vmatprep.subr.mxu1 %v2364_v16  ;;  %v2495_v3 = vsel (!%p2880_p5), %vm2474_vm14, %v2494_v49, %v2493_v27 }
 0x1e0   : > { %v2478_v47 = vsel (!%p2880_p5), %vm2477_vm15, %v2476_v11, %v2475_v35 }
 0x1e1   : > { %v2481_v43 = vsel (!%p2880_p5), %vm2480_vm0, %v2479_v15, %v2478_v47 }
 0x1e2   : > { %3211 = vmatpush3.bf16.msra.mxu0 %v3210_v41  ;;  %v2484_v22 = vsel (!%p2880_p5), %vm2483_vm1, %v2482_v13, %v2481_v43 }
 0x1e3   : > { %v2487_v12 = vsel (!%p2880_p5), %vm2486_vm2, %v2485_v53, %v2484_v22 }
 0x1e4   : > { %v2490_v41 = vsel (!%p2880_p5), %vm2489_vm3, %v2488_v7, %v2487_v12 }
 0x298   : > { %v2092_v50 = vpop.f32.mrb[16].mxu1 }
 0x299   : > { %v2194_v18 = vsel %vm2193_vm12, %v2092_v50, -inf  ;;  %v3069_v0 = vpop.f32.mrb[17].mxu1 }
 0x29a   : > { %2195 = vmax.xlane.f32.xlu0 %v2194_v18  ;;  %v2497_v18 = vsel (!%p2880_p5), %vm2477_vm15, %v2496_v34, %v2495_v3  ;;  %v2504_v0 = vrot.slane (!%p2880_p5), %v2461_v44, 2 }
 0x2a8   : > { %v2189_v4 = vpop.f32.mrb[18].mxu0 }
 0x2a9   : > { %v3088_v60 = vpop.f32.mrb[19].mxu0  ;;  %v2197_v5 = vsel %vm2193_vm12, %v2189_v4, -inf }
 0x2aa   : > { %2198 = vmax.xlane.f32.xlu0 %v2197_v5  ;;  %v2499_v60 = vsel (!%p2880_p5), %vm2480_vm0, %v2498_v62, %v2497_v18 }
 0x2ab   : > { %v2501_v5 = vsel (!%p2880_p5), %vm2483_vm1, %v2500_v58, %v2499_v60 }
 0x327   : > { %v2196_v63 = vpop.xlane.xlu0 %2195 }
 0x328   : > { %v2200_v61 = vsub.f32 %v2092_v50, %v2196_v63  ;;  %v2881_v50 = vld [vmem:[%s4991_s11] ss:$0 sm:$0xff] (!%p2880_p5) }
 0x32a   : > { %v2202_v40 = vmul.f32 1.442695, %v2200_v61 }
 0x32c   : > { %3254 = vpow2.f32 %v2202_v40  ;;  %v2503_v40 = vsel (!%p2880_p5), %vm2486_vm2, %v2502_v57, %v2501_v5 }
 0x336   : > { %v3255_v20 = vpop.eup %3254 }
 0x337   : > { %3106 = vmatmul.mubr.msk.f32.vlgmr.msra.gmra.mrb[18].mxu1 %vm2193_vm12, %v3255_v20  ;;  %v2199_v29 = vpop.xlane.xlu0 %2198  ;;  %v2206_v2 = vsel %vm2193_vm12, %v3255_v20, 0.0  ;;  %v2505_v20 = vsel (!%p2880_p5), %vm2489_vm3, %v2504_v0, %v2503_v40 }
 0x338   : > { %v2201_v39 = vsub.f32 %v2189_v4, %v2199_v29  ;;  %2207 = vadd.xlane.f32.xlu1 %v2206_v2  ;;  %3128 = vmatpush3.msra.mxu1 %v2364_v16 }
 0x33a   : > { %v2204_v8 = vmul.f32 1.442695, %v2201_v39 }
 0x33c   : > { %3256 = vpow2.f32 %v2204_v8 }
 0x346   : > { %v3257_v28 = vpop.eup %3256 }
 0x347   : > { %3125 = vmatmul.mubr.msk.f32.vlgmr.msra.gmra.mrb[20].mxu0 %vm2193_vm12, %v3257_v28  ;;  %v2209_v32 = vsel %vm2193_vm12, %v3257_v28, 0.0 }
 0x348   : > { %2210 = vadd.xlane.f32.xlu1 %v2209_v32 }
 0x3c5   : > { %v2208_v33 = vpop.xlane.xlu1 %2207 }
 0x3c6   : > { %3258 = vrcp.f32 %v2208_v33 }
 0x3d0   : > { %v3259_v25 = vpop.eup %3258 }
 0x3d5   : > { %v2211_v48 = vpop.xlane.xlu1 %2210 }
 0x3d6   : > { %3260 = vrcp.f32 %v2211_v48 }
 0x3e0   : > { %v3261_v52 = vpop.eup %3260 }
 0x40a   : > { %v2281_v55 = vpop.f32.mrb[18].mxu1 }
 0x40b   : > { %v2359_v1 = vmul.f32 %v3259_v25, %v2281_v55  ;;  %v3107_v10 = vpop.f32.mrb[19].mxu1 }
 0x40d   : > { %3129 = vmatprep.mubr.msk.f32.mxu1 %vm1998_vm10, %v2359_v1 }
 0x41a   : > { %v2354_v51 = vpop.f32.mrb[20].mxu0 }
 0x41b   : > { %v2361_v17 = vmul.f32 %v3261_v52, %v2354_v51  ;;  %v3126_v56 = vpop.f32.mrb[21].mxu0 }
 0x41d   : > { %3130 = vmatmul.mubr.msk.f32.vlgmr.msra.gmra.mrb[20].mxu1 %vm1998_vm10, %v2361_v17 }
 0x4ee   : > { %2453 = sbr.rel (%p2880_p5) target bundleno = 1609 (0x649), region = 84 }
 0x4f0   : > { %v3131_v21 = vpop.f32.mrb[20].mxu1 }
 0x4f1   : > { %v2447_v6 = vadd.f32 %v3131_v21, %v2363_v26  ;;  %v2437_v59 = vpop.f32.mrb[21].mxu1 }
 0x4f2   : > { %v2446_v37 = vadd.f32 %v2437_v59, %v2362_v54 }
 0x4f3   : > { %2449 = vst.msk [vmem:[#allocation5 + $0x8] sm:$0xff] %vm1476_vm8, %v2447_v6  ;;  %v3308_v6 = vmov (!%p2880_p5), 1966171168  }
 0x4f4   : > { %2448 = vst.msk [vmem:[#allocation5] sm:$0xff] %vm1476_vm8, %v2446_v37  ;;  %v2568_v59 = vunpack.c.l.s4 (!%p2880_p5), %v3308_v6  ;;  %v2570_v37 = vlaneseq (!%p2880_p5) }
 0x4f6   : > { %v2569_v24 = vunpack.c.0.s8 %v2568_v59  ;;  %v2571_v42 = vshrl.u32 %v2570_v37, 7 }
 0x4f8   : > { %v2572_v23 = vsub.s32 %v2569_v24, %v2571_v42 }
 0x4fa   : > { %v2508_v63 = vld [vmem:[#allocation5 + $0x8] sm:$0xff] }
 0x4fb   : > { %v2507_v46 = vld [vmem:[#allocation5] sm:$0xff]  ;;  %v2510_v2 = vadd.f32 %v2508_v63, %v2505_v20 }
 0x4fc   : > { %v2509_v4 = vadd.f32 %v2507_v46, %v2490_v41 }
 0x4fd   : > { %v2519_v39 = vadd.f32 %v2881_v50, %v2510_v2 }
 0x4fe   : > { %v2518_v61 = vadd.f32 %v2881_v50, %v2509_v4 }
 0x4ff   : > { %v2523_v8 = vsel %vm1476_vm8, %v2519_v39, 0.0 }
 0x500   : > { %v2520_v29 = vsel %vm1476_vm8, %v2518_v61, 0.0 }
 0x501   : > { %2521 = vadd.xlane.f32.xlu0 %v2520_v29 }
 0x505   : > { %2524 = vadd.xlane.f32.xlu0 %v2523_v8 }
 0x58e   : > { %v2522_v28 = vpop.xlane.xlu0 %2521 }
 0x58f   : > { %v2527_v32 = vmul.f32 0.03125, %v2522_v28 }
 0x591   : > { %v2529_v16 = vsub.f32 %v2518_v61, %v2527_v32 }
 0x592   : > { %v2525_v33 = vpop.xlane.xlu0 %2524 }
 0x593   : > { %v2528_v25 = vmul.f32 0.03125, %v2525_v33  ;;  %v2531_v55 = vmul.f32 %v2529_v16, %v2529_v16 }
 0x595   : > { %v2530_v1 = vsub.f32 %v2519_v39, %v2528_v25  ;;  %v2533_v10 = vsel %vm1476_vm8, %v2531_v55, 0.0 }
 0x596   : > { %2534 = vadd.xlane.f32.xlu1 %v2533_v10 }
 0x597   : > { %v2532_v48 = vmul.f32 %v2530_v1, %v2530_v1 }
 0x599   : > { %v2536_v52 = vsel %vm1476_vm8, %v2532_v48, 0.0 }
 0x59a   : > { %2537 = vadd.xlane.f32.xlu1 %v2536_v52 }
 0x623   : > { %v2535_v51 = vpop.xlane.xlu1 %2534 }
 0x624   : > { %v2539_v17 = vmul.f32 0.03125, %v2535_v51 }
 0x626   : > { %v2541_v56 = vadd.f32 1e-05, %v2539_v17 }
 0x627   : > { %v2538_v26 = vpop.xlane.xlu1 %2537 }
 0x628   : > { %3262 = vrsqrt.f32 %v2541_v56  ;;  %v2540_v54 = vmul.f32 0.03125, %v2538_v26 }
 0x62a   : > { %v2542_v21 = vadd.f32 1e-05, %v2540_v54 }
 0x62c   : > { %3264 = vrsqrt.f32 %v2542_v21 }
 0x632   : > { %v3263_v19 = vpop.eup %3262 }
 0x633   : > { %v2545_v31 = vmul.f32 %v3263_v19, %v2529_v16 }
 0x635   : > { %v2554_v9 = vmul.f32 %v2882_v45, %v2545_v31 }
 0x636   : > { %v3265_v44 = vpop.eup %3264 }
 0x637   : > { %v2563_v38 = vadd.f32 %v2883_v36, %v2554_v9  ;;  %v2546_v11 = vmul.f32 %v3265_v44, %v2530_v1 }
 0x639   : > { %v2566_v14 = vcombine.high %v2563_v38, %v2563_v38  ;;  %v2573_v15 = vrot.slane %v2563_v38, %v2572_v23  ;;  %v2555_v13 = vmul.f32 %v2882_v45, %v2546_v11 }
 0x63b   : > { %v2580_v35 = vrot.slane %v2566_v14, %v2572_v23  ;;  %v2581_v53 = vcombine.high %v2573_v15, %v2573_v15  ;;  %v2589_v47 = vrot.slane %v2573_v15, %v2572_v23  ;;  %v2564_v7 = vadd.f32 %v2883_v36, %v2555_v13 }
 0x63d   : > { %v2582_v30 = vcombine.high %v2580_v35, %v2580_v35  ;;  %v2596_v43 = vrot.slane %v2580_v35, %v2572_v23  ;;  %v2603_v49 = vrot.slane %v2581_v53, %v2572_v23  ;;  %v2611_v34 = vcombine.high %v2589_v47, %v2589_v47  ;;  %2624 = vst.msk [vmem:[#allocation6] sm:$0x1] %vm2623_vm4, %v2589_v47 }
 0x63e   : > { %v2633_v62 = vcombine.high %v2564_v7, %v2564_v7  ;;  %v2640_v22 = vrot.slane %v2564_v7, %v2572_v23 }
 0x63f   : > { %v2610_v46 = vrot.slane %v2582_v30, %v2572_v23  ;;  %v2612_v27 = vcombine.high %v2596_v43, %v2596_v43  ;;  %v2613_v58 = vcombine.high %v2603_v49, %v2603_v49  ;;  %2625 = vst.msk [vmem:[#allocation6 + $0x2] sm:$0x1] %vm2623_vm4, %v2603_v49  ;;  %2626 = vst.msk [vmem:[#allocation6 + $0x4] sm:$0x1] %vm2623_vm4, %v2611_v34 }
 0x640   : > { %2628 = vst.msk [vmem:[#allocation6 + $0x8] sm:$0x1] %vm2623_vm4, %v2596_v43  ;;  %v2647_v12 = vrot.slane %v2633_v62, %v2572_v23  ;;  %v2648_v3 = vcombine.high %v2640_v22, %v2640_v22  ;;  %v2656_v57 = vrot.slane %v2640_v22, %v2572_v23 }
 0x641   : > { %v2614_v41 = vcombine.high %v2610_v46, %v2610_v46  ;;  %2627 = vst.msk [vmem:[#allocation6 + $0x6] sm:$0x1] %vm2623_vm4, %v2613_v58  ;;  %2629 = vst.msk [vmem:[#allocation6 + $0xa] sm:$0x1] %vm2623_vm4, %v2610_v46 }
 0x642   : > { %2630 = vst.msk [vmem:[#allocation6 + $0xc] sm:$0x1] %vm2623_vm4, %v2612_v27  ;;  %v2649_v50 = vcombine.high %v2647_v12, %v2647_v12  ;;  %v2663_v18 = vrot.slane %v2647_v12, %v2572_v23  ;;  %v2670_v0 = vrot.slane %v2648_v3, %v2572_v23  ;;  %v2678_v4 = vcombine.high %v2656_v57, %v2656_v57 }
 0x643   : > { %2690 = vst.msk [vmem:[#allocation6 + $0x1] sm:$0x1] %vm2623_vm4, %v2656_v57  ;;  %2631 = vst.msk [vmem:[#allocation6 + $0xe] sm:$0x1] %vm2623_vm4, %v2614_v41 }
 0x644   : > { %v2677_v60 = vrot.slane %v2649_v50, %v2572_v23  ;;  %v2679_v5 = vcombine.high %v2663_v18, %v2663_v18  ;;  %v2680_v63 = vcombine.high %v2670_v0, %v2670_v0  ;;  %2691 = vst.msk [vmem:[#allocation6 + $0x3] sm:$0x1] %vm2623_vm4, %v2670_v0  ;;  %2692 = vst.msk [vmem:[#allocation6 + $0x5] sm:$0x1] %vm2623_vm4, %v2678_v4 }
 0x645   : > { %2694 = vst.msk [vmem:[#allocation6 + $0x9] sm:$0x1] %vm2623_vm4, %v2663_v18 }
 0x646   : > { %v2681_v61 = vcombine.high %v2677_v60, %v2677_v60  ;;  %2693 = vst.msk [vmem:[#allocation6 + $0x7] sm:$0x1] %vm2623_vm4, %v2680_v63  ;;  %2695 = vst.msk [vmem:[#allocation6 + $0xb] sm:$0x1] %vm2623_vm4, %v2677_v60 }
 0x647   : > { %2696 = vst.msk [vmem:[#allocation6 + $0xd] sm:$0x1] %vm2623_vm4, %v2679_v5 }
 0x648   : > { %2697 = vst.msk [vmem:[#allocation6 + $0xf] sm:$0x1] %vm2623_vm4, %v2681_v61 }
 0x649 PF: > { %p3216_p6 = scmp.eq.s32.totalorder %s3393_s30, 3  ;;  %s3309_s21 = smov [#allocation6]  }
 0x64a   : > { %s2704_s24 = sshll.u32 %s3309_s21, 4  ;;  %s2705_s24 = int_to_ptr.vmem [resolvable:$true] %s2704_s24 }
 0x64b   : > { %s3266_s26 = scalar_lea.vmem %s2705_s24, 256  ;;  %p3273_p10 = scmp.lt.s32.totalorder %s2705_s24, %s2705_s24 }
 0x64c   : > { %p3267_p7 = scmp.ne.s32.totalorder %s2705_s24, %s3266_s26  ;;  %p3274_p11 = scmp.lt.s32.totalorder %s3266_s26, %s3266_s26 }
 0x64e   : > { %p3268_p8 = pnand %p3267_p7, %p3216_p6  ;;  %p3275_p12 = por %p3274_p11, %p3273_p10 }
 0x650   : > { %p3269_p9 = pneg %p3268_p8 }
 0x652   : > { %p3276_p13 = pnand %p3275_p12, %p3269_p9 }
 0x654   : > { %3279 = shalt.err (!%p3276_p13)
}
 0x655   : > { %s5276_s13 = sld [smem:[#allocation87_spill]] }
 0x65b   : > { %s3280_s22 = scalar_lea.hbm %s5276_s13, 256 }
 0x65c   : > { %p3281_p0 = scmp.ne.s32.totalorder %s5276_s13, %s3280_s22  ;;  %p3286_p3 = scmp.lt.u32.totalorder %s3280_s22, %s5276_s13 }
 0x65e   : > { %p3282_p1 = pnand %p3281_p0, %p3216_p6 }
 0x660   : > { %p3283_p2 = pneg %p3282_p1 }
 0x662   : > { %p3288_p4 = pnand %p3286_p3, %p3283_p2 }
 0x664   : > { %3291 = shalt.err (!%p3288_p4)
}
 0x665   : > { %s3310_s17 = smov 32   ;;  %s3311_s18 = smov 2  }
 0x666   : > { %3213 = dma.vmem_to_hbm [thread:$0]  (%p3216_p6), %s2705_s24, 256, %s5276_s13, [#allocation7], %s3310_s17, %s3310_s17, %s3311_s18  }
 0x667   : > { %3297 = dma.done.wait (%p3216_p6), [#allocation7], 256  }
 0x668   : > { %3299 = vsyncadd (%p3216_p6), [#allocation7], 4294967040 }
 0x669 PF: > { %s5277_s4 = sld [smem:[#allocation9_spill]] }
 0x66f   : > { %s25_s29 = sadd.s32 1, %s5277_s4  }
 0x670   : > { %p22_p5 = scmp.ge.s32.totalorder %s25_s29, 6  }
 0x672   :  { %24 = sbr.rel (!%p22_p5) target bundleno = 5 (0x5), region = 129 }
 0x679   :  { %2720 = vsyncpa [#allocation7], 1 }
 0x67a   :  { %2722 = vsyncpa [#allocation7 + $0x1], 1 }

</bundles_post_ra>
